<compile_context>
chip_gen: v6e
topology: v6e:2x2x1
jax: 0.10.0
libtpu: 0.0.40
codegen_flags: <defaults>
</compile_context>

<pallas_src>
import functools

import jax
import jax.numpy as jnp
from jax.experimental import pallas as pl
from jax.experimental.pallas import tpu as pltpu


def se_basic_block_kernel(x_ref, wb1_ref, g1_ref, b1_ref, wb2_ref, g2_ref, b2_ref,
                          fc1w_ref, fc1b_ref, fc2w_ref, fc2b_ref,
                          pool_ref, unpool_ref, o_ref, pad_ref, *, B, H, W, C):
    BH, WC = B * H, W * C
    eps = 1e-5
    inv_n = 1.0 / float(B * H * W)
    inv_hw = 1.0 / float(H * W)

    pool = pool_ref[...]        # (W*C, C)   lane -> channel pooling
    unpool = unpool_ref[...]    # (C, W*C)   channel -> lane broadcast

    # Zero the vertically padded scratch once per grid step: only the top /
    # bottom halo rows must stay zero, the interior is fully overwritten by
    # every conv call.  Zeroed per step (not once) so the stains stay
    # independent under megacore "parallel" scheduling.
    pad_ref[...] = jnp.zeros(pad_ref.shape, jnp.float32)

    def conv3x3(v, wb_ref):
        # v: (B*H, W*C).  Write into the interior rows of the padded buffer,
        # then contract the three vertically shifted slabs against the
        # block-banded weights: one MXU matmul (M=B*H, K=W*C, N=W*C) per dy.
        pad_ref[:, 1:H + 1, :] = v.reshape(B, H, WC)
        acc = jnp.zeros((BH, WC), jnp.float32)
        for dy in range(3):
            slab = pad_ref[:, dy:dy + H, :].reshape(BH, WC)
            acc = acc + jnp.dot(slab, wb_ref[dy],
                                preferred_element_type=jnp.float32)
        return acc

    def bn_scale_bias(s_c, q_c, g_ref, b_ref):
        # Fold training-mode batch stats into one per-channel scale/bias.
        mean = s_c * inv_n                                    # (1, C)
        var = q_c * inv_n - mean * mean                       # (1, C)
        scale = g_ref[...] * jax.lax.rsqrt(var + eps)         # (1, C)
        bias = b_ref[...] - mean * scale                      # (1, C)
        return scale, bias

    x = x_ref[...].astype(jnp.float32)                        # (B*H, W*C)

    # ---- conv1 -> bn1 -> relu ------------------------------------------
    v1 = conv3x3(x, wb1_ref)
    sq = jnp.concatenate([jnp.sum(v1, axis=0, keepdims=True),
                          jnp.sum(v1 * v1, axis=0, keepdims=True)], axis=0)
    sq_c = jnp.dot(sq, pool, preferred_element_type=jnp.float32)       # (2, C)
    scale1, bias1 = bn_scale_bias(sq_c[0:1], sq_c[1:2], g1_ref, b1_ref)
    scale1_l = jnp.dot(scale1, unpool, preferred_element_type=jnp.float32)
    bias1_l = jnp.dot(bias1, unpool, preferred_element_type=jnp.float32)
    v1 = jnp.maximum(v1 * scale1_l + bias1_l, 0.0)

    # ---- conv2 -> bn2 -> SE (fused) -------------------------------------
    v2 = conv3x3(v1, wb2_ref)
    v2b = v2.reshape(B, H, WC)
    s_b = jnp.sum(v2b, axis=1)                                 # (B, W*C) per-image sums
    q_l = jnp.sum(v2 * v2, axis=0, keepdims=True)              # (1, W*C)
    rows_c = jnp.dot(jnp.concatenate([s_b, q_l], axis=0), pool,
                     preferred_element_type=jnp.float32)       # (B+1, C)
    s_bc = rows_c[0:B]                                         # (B, C) per-image channel sums
    s_c = jnp.sum(s_bc, axis=0, keepdims=True)                 # (1, C)
    scale2, bias2 = bn_scale_bias(s_c, rows_c[B:B + 1], g2_ref, b2_ref)

    # SE squeeze on the bn2 output == BN applied to the per-image pooled mean.
    p = s_bc * inv_hw * scale2 + bias2                         # (B, C)
    y = jnp.maximum(jnp.dot(p, fc1w_ref[...],
                            preferred_element_type=jnp.float32) + fc1b_ref[...], 0.0)
    y = jax.nn.sigmoid(jnp.dot(y, fc2w_ref[...],
                               preferred_element_type=jnp.float32) + fc2b_ref[...])   # (B, C)

    # bn2 followed by SE channel scaling collapses into one per-(image, chan)
    # scale/bias; apply it in a single FMA pass over the (B*H, W*C) slab.
    se_scale_l = jnp.dot(scale2 * y, unpool, preferred_element_type=jnp.float32)   # (B, W*C)
    se_bias_l = jnp.dot(bias2 * y, unpool, preferred_element_type=jnp.float32)     # (B, W*C)
    out = v2b * se_scale_l[:, None, :] + se_bias_l[:, None, :]
    out = out.reshape(BH, WC) + x                              # residual
    o_ref[...] = jnp.maximum(out, 0.0).astype(o_ref.dtype)     # final relu


def _banded_conv_weights(w, W, C):
    """HWIO (3, 3, Cin, Cout) -> (3, W*C, W*C) block-banded matrices.

    Slice dy contracts the dy-shifted activation slab; the three horizontal
    taps land on the block sub/main/super diagonals, so out-of-range taps
    (the horizontal zero padding) are simply absent from the band.
    """
    w = w.astype(jnp.float32)
    mats = []
    for dy in range(3):
        m = jnp.zeros((W * C, W * C), jnp.float32)
        for dx in range(3):
            m = m + jnp.kron(jnp.eye(W, k=1 - dx, dtype=jnp.float32), w[dy, dx])
        mats.append(m)
    return jnp.stack(mats)


def se_basic_block(x, params, num_stains=2):
    """x: (B, C_total, H, W) NCHW, C_total = num_stains * planes."""
    w1, g1, b1, w2, g2, b2, fc1w, fc1b, fc2w, fc2b = params
    B, Ctot, H, W = x.shape
    S = num_stains
    C = Ctot // S
    BH, WC = B * H, W * C

    # NCHW -> lane-dense (stain, B*H, W*C).
    # TODO(synk): if the surrounding model kept NHWC end-to-end, this relayout
    #             (and the inverse below) would disappear entirely.
    xs = jnp.transpose(x.reshape(B, S, C, H, W), (1, 0, 3, 4, 2)).reshape(S, BH, WC)

    wb1 = _banded_conv_weights(w1, W, C)
    wb2 = _banded_conv_weights(w2, W, C)
    pool = jnp.tile(jnp.eye(C, dtype=jnp.float32), (W, 1))      # (W*C, C)
    unpool = pool.T                                             # (C, W*C)

    def full_spec(shape):
        n = len(shape)
        return pl.BlockSpec(shape, lambda s, _n=n: (0,) * _n)

    grid_spec = pltpu.PrefetchScalarGridSpec(
        num_scalar_prefetch=0,
        grid=(S,),
        in_specs=[
            pl.BlockSpec((None, BH, WC), lambda s: (s, 0, 0)),
            full_spec(wb1.shape), full_spec(g1.shape), full_spec(b1.shape),
            full_spec(wb2.shape), full_spec(g2.shape), full_spec(b2.shape),
            full_spec(fc1w.shape), full_spec(fc1b.shape),
            full_spec(fc2w.shape), full_spec(fc2b.shape),
            full_spec(pool.shape), full_spec(unpool.shape),
        ],
        out_specs=pl.BlockSpec((None, BH, WC), lambda s: (s, 0, 0)),
        scratch_shapes=[pltpu.VMEM((B, H + 2, WC), jnp.float32)],
    )

    kernel = functools.partial(se_basic_block_kernel, B=B, H=H, W=W, C=C)
    out = pl.pallas_call(
        kernel,
        out_shape=jax.ShapeDtypeStruct((S, BH, WC), x.dtype),
        grid_spec=grid_spec,
        compiler_params=pltpu.CompilerParams(dimension_semantics=("parallel",)),
    )(xs, wb1, g1, b1, wb2, g2, b2, fc1w, fc1b, fc2w, fc2b, pool, unpool)

    # (S, B*H, W*C) -> NCHW with stain chunks concatenated along channels.
    out = out.reshape(S, B, H, W, C)
    out = jnp.transpose(out, (1, 0, 4, 2, 3)).reshape(B, Ctot, H, W)
    return out


def reference(x, params, num_stains=2):
    """Pure-JAX reference (stock ops) used as a correctness check."""
    w1, g1, b1, w2, g2, b2, fc1w, fc1b, fc2w, fc2b = params
    B, Ctot, H, W = x.shape
    C = Ctot // num_stains
    eps = 1e-5

    def conv(v, w):
        return jax.lax.conv_general_dilated(
            v, w, (1, 1), ((1, 1), (1, 1)),
            dimension_numbers=("NHWC", "HWIO", "NHWC"),
            precision=jax.lax.Precision.HIGHEST)

    def bn(v, g, b):
        m = jnp.mean(v, axis=(0, 1, 2), keepdims=True)
        var = jnp.mean((v - m) ** 2, axis=(0, 1, 2), keepdims=True)
        return (v - m) * jax.lax.rsqrt(var + eps) * g.reshape(1, 1, 1, C) + b.reshape(1, 1, 1, C)

    outs = []
    for i in range(num_stains):
        xi = jnp.transpose(x[:, i * C:(i + 1) * C], (0, 2, 3, 1))  # NHWC chunk
        o = jax.nn.relu(bn(conv(xi, w1), g1, b1))
        o = bn(conv(o, w2), g2, b2)
        y = jnp.mean(o, axis=(1, 2))
        y = jax.nn.relu(y @ fc1w + fc1b)
        y = jax.nn.sigmoid(y @ fc2w + fc2b)
        o = o * y[:, None, None, :]
        o = o + xi
        outs.append(jnp.transpose(o, (0, 3, 1, 2)))
    return jax.nn.relu(jnp.concatenate(outs, axis=1))


if __name__ == "__main__":
    # SEBasicBlock(inplanes=16, planes=16, stride=1, downsample=None,
    #              reduction=4, num_stains=2); input channels = 2 * 16 = 32
    B, H, W = 2, 8, 8
    planes, reduction, num_stains = 16, 4, 2
    C, hid = planes, planes // reduction

    key = jax.random.PRNGKey(0)
    k = jax.random.split(key, 12)

    # conv weights in HWIO: (3, 3, Cin, Cout)
    w1 = 0.1 * jax.random.normal(k[0], (3, 3, C, C), jnp.float32)
    w2 = 0.1 * jax.random.normal(k[1], (3, 3, C, C), jnp.float32)
    g1 = 1.0 + 0.1 * jax.random.normal(k[2], (1, C), jnp.float32)
    b1 = 0.1 * jax.random.normal(k[3], (1, C), jnp.float32)
    g2 = 1.0 + 0.1 * jax.random.normal(k[4], (1, C), jnp.float32)
    b2 = 0.1 * jax.random.normal(k[5], (1, C), jnp.float32)
    # SE fc weights stored pre-transposed: (in, out)
    fc1w = 0.2 * jax.random.normal(k[6], (C, hid), jnp.float32)
    fc1b = 0.1 * jax.random.normal(k[7], (1, hid), jnp.float32)
    fc2w = 0.2 * jax.random.normal(k[8], (hid, C), jnp.float32)
    fc2b = 0.1 * jax.random.normal(k[9], (1, C), jnp.float32)
    params = (w1, g1, b1, w2, g2, b2, fc1w, fc1b, fc2w, fc2b)

    x = jax.random.normal(k[10], (B, num_stains * C, H, W), jnp.float32)

    out = jax.block_until_ready(se_basic_block(x, params, num_stains=num_stains))
    ref = jax.block_until_ready(reference(x, params, num_stains=num_stains))

    assert out.shape == x.shape, (out.shape, x.shape)
    max_err = float(jnp.max(jnp.abs(out - ref)))
    assert max_err < 2e-2, f"kernel/reference mismatch: max abs err {max_err}"
    print("KERNEL_OK")
</pallas_src>

<mosaic_0001>
module attributes {stable_mosaic.version = 11 : i64} {
  func.func @se_basic_block_kernel(%arg0: i32, %arg1: memref<1x16x128xf32, #tpu.memory_space<vmem>>, %arg2: memref<3x128x128xf32, #tpu.memory_space<vmem>>, %arg3: memref<1x16xf32, #tpu.memory_space<vmem>>, %arg4: memref<1x16xf32, #tpu.memory_space<vmem>>, %arg5: memref<3x128x128xf32, #tpu.memory_space<vmem>>, %arg6: memref<1x16xf32, #tpu.memory_space<vmem>>, %arg7: memref<1x16xf32, #tpu.memory_space<vmem>>, %arg8: memref<16x4xf32, #tpu.memory_space<vmem>>, %arg9: memref<1x4xf32, #tpu.memory_space<vmem>>, %arg10: memref<4x16xf32, #tpu.memory_space<vmem>>, %arg11: memref<1x16xf32, #tpu.memory_space<vmem>>, %arg12: memref<128x16xf32, #tpu.memory_space<vmem>>, %arg13: memref<16x128xf32, #tpu.memory_space<vmem>>, %arg14: memref<1x16x128xf32, #tpu.memory_space<vmem>>, %arg15: memref<2x10x128xf32, #tpu.memory_space<vmem>>) attributes {dimension_semantics = [#tpu.dimension_semantics<parallel>], iteration_bounds = array<i64: 2>, scalar_prefetch = 0 : i64, scratch_operands = 1 : i64, tpu.core_type = #tpu.core_type<tc>, window_params = [{transform_indices = @transform_0, window_bounds = array<i64: 1, 16, 128>}, {pipeline_mode = #tpu.pipeline_mode<synchronous>, transform_indices = @transform_1, window_bounds = array<i64: 3, 128, 128>}, {pipeline_mode = #tpu.pipeline_mode<synchronous>, transform_indices = @transform_2, window_bounds = array<i64: 1, 16>}, {pipeline_mode = #tpu.pipeline_mode<synchronous>, transform_indices = @transform_3, window_bounds = array<i64: 1, 16>}, {pipeline_mode = #tpu.pipeline_mode<synchronous>, transform_indices = @transform_4, window_bounds = array<i64: 3, 128, 128>}, {pipeline_mode = #tpu.pipeline_mode<synchronous>, transform_indices = @transform_5, window_bounds = array<i64: 1, 16>}, {pipeline_mode = #tpu.pipeline_mode<synchronous>, transform_indices = @transform_6, window_bounds = array<i64: 1, 16>}, {pipeline_mode = #tpu.pipeline_mode<synchronous>, transform_indices = @transform_7, window_bounds = array<i64: 16, 4>}, {pipeline_mode = #tpu.pipeline_mode<synchronous>, transform_indices = @transform_8, window_bounds = array<i64: 1, 4>}, {pipeline_mode = #tpu.pipeline_mode<synchronous>, transform_indices = @transform_9, window_bounds = array<i64: 4, 16>}, {pipeline_mode = #tpu.pipeline_mode<synchronous>, transform_indices = @transform_10, window_bounds = array<i64: 1, 16>}, {pipeline_mode = #tpu.pipeline_mode<synchronous>, transform_indices = @transform_11, window_bounds = array<i64: 128, 16>}, {pipeline_mode = #tpu.pipeline_mode<synchronous>, transform_indices = @transform_12, window_bounds = array<i64: 16, 128>}, {transform_indices = @transform_13, window_bounds = array<i64: 1, 16, 128>}]} {
    %c0 = arith.constant 0 : index
    %c0_0 = arith.constant 0 : index
    %0 = vector.load %arg12[%c0, %c0_0] : memref<128x16xf32, #tpu.memory_space<vmem>>, vector<128x16xf32>
    %c0_1 = arith.constant 0 : index
    %c0_2 = arith.constant 0 : index
    %1 = vector.load %arg13[%c0_1, %c0_2] : memref<16x128xf32, #tpu.memory_space<vmem>>, vector<16x128xf32>
    %cst = arith.constant 0.000000e+00 : f32
    %2 = vector.broadcast %cst : f32 to vector<2x10x128xf32>
    %c0_3 = arith.constant 0 : index
    %c0_4 = arith.constant 0 : index
    %c0_5 = arith.constant 0 : index
    %3 = vector.load %arg15[%c0_3, %c0_4, %c0_5] : memref<2x10x128xf32, #tpu.memory_space<vmem>>, vector<2x10x128xf32>
    tpu.vector_store %arg15[%c0_3, %c0_4, %c0_5], %2 {strides = array<i32>} : memref<2x10x128xf32, #tpu.memory_space<vmem>>, vector<2x10x128xf32>,
    %c0_6 = arith.constant 0 : index
    %c0_7 = arith.constant 0 : index
    %c0_8 = arith.constant 0 : index
    %4 = vector.load %arg1[%c0_6, %c0_7, %c0_8] : memref<1x16x128xf32, #tpu.memory_space<vmem>>, vector<1x16x128xf32>
    %5 = vector.shape_cast %4 : vector<1x16x128xf32> to vector<16x128xf32>
    %6 = vector.shape_cast %5 : vector<16x128xf32> to vector<2x8x128xf32>
    %c0_9 = arith.constant 0 : index
    %c1 = arith.constant 1 : index
    %c0_10 = arith.constant 0 : index
    %7 = vector.load %arg15[%c0_9, %c1, %c0_10] : memref<2x10x128xf32, #tpu.memory_space<vmem>>, vector<2x8x128xf32>
    tpu.vector_store %arg15[%c0_9, %c1, %c0_10], %6 {strides = array<i32>} : memref<2x10x128xf32, #tpu.memory_space<vmem>>, vector<2x8x128xf32>,
    %cst_11 = arith.constant 0.000000e+00 : f32
    %8 = vector.broadcast %cst_11 : f32 to vector<16x128xf32>
    %c0_12 = arith.constant 0 : index
    %c0_13 = arith.constant 0 : index
    %c0_14 = arith.constant 0 : index
    %9 = vector.load %arg15[%c0_12, %c0_13, %c0_14] : memref<2x10x128xf32, #tpu.memory_space<vmem>>, vector<2x8x128xf32>
    %10 = vector.shape_cast %9 : vector<2x8x128xf32> to vector<16x128xf32>
    %c0_15 = arith.constant 0 : index
    %c0_16 = arith.constant 0 : index
    %c0_17 = arith.constant 0 : index
    %11 = vector.load %arg2[%c0_15, %c0_16, %c0_17] : memref<3x128x128xf32, #tpu.memory_space<vmem>>, vector<1x128x128xf32>
    %12 = vector.shape_cast %11 : vector<1x128x128xf32> to vector<128x128xf32>
    %cst_18 = arith.constant dense<0.000000e+00> : vector<16x128xf32>
    %13 = tpu.matmul %10, %12, %cst_18 {dimension_numbers = #tpu.dot_dimension_numbers<[1], [0], [0], [1], [0, 0, 1, 1], [], []>} : vector<16x128xf32>, vector<128x128xf32>, vector<16x128xf32> -> vector<16x128xf32>
    %14 = arith.addf %8, %13 : vector<16x128xf32>
    %c0_19 = arith.constant 0 : index
    %c1_20 = arith.constant 1 : index
    %c0_21 = arith.constant 0 : index
    %15 = vector.load %arg15[%c0_19, %c1_20, %c0_21] : memref<2x10x128xf32, #tpu.memory_space<vmem>>, vector<2x8x128xf32>
    %16 = vector.shape_cast %15 : vector<2x8x128xf32> to vector<16x128xf32>
    %c1_22 = arith.constant 1 : index
    %c0_23 = arith.constant 0 : index
    %c0_24 = arith.constant 0 : index
    %17 = vector.load %arg2[%c1_22, %c0_23, %c0_24] : memref<3x128x128xf32, #tpu.memory_space<vmem>>, vector<1x128x128xf32>
    %18 = vector.shape_cast %17 : vector<1x128x128xf32> to vector<128x128xf32>
    %cst_25 = arith.constant dense<0.000000e+00> : vector<16x128xf32>
    %19 = tpu.matmul %16, %18, %cst_25 {dimension_numbers = #tpu.dot_dimension_numbers<[1], [0], [0], [1], [0, 0, 1, 1], [], []>} : vector<16x128xf32>, vector<128x128xf32>, vector<16x128xf32> -> vector<16x128xf32>
    %20 = arith.addf %14, %19 : vector<16x128xf32>
    %c0_26 = arith.constant 0 : index
    %c2 = arith.constant 2 : index
    %c0_27 = arith.constant 0 : index
    %21 = vector.load %arg15[%c0_26, %c2, %c0_27] : memref<2x10x128xf32, #tpu.memory_space<vmem>>, vector<2x8x128xf32>
    %22 = vector.shape_cast %21 : vector<2x8x128xf32> to vector<16x128xf32>
    %c2_28 = arith.constant 2 : index
    %c0_29 = arith.constant 0 : index
    %c0_30 = arith.constant 0 : index
    %23 = vector.load %arg2[%c2_28, %c0_29, %c0_30] : memref<3x128x128xf32, #tpu.memory_space<vmem>>, vector<1x128x128xf32>
    %24 = vector.shape_cast %23 : vector<1x128x128xf32> to vector<128x128xf32>
    %cst_31 = arith.constant dense<0.000000e+00> : vector<16x128xf32>
    %25 = tpu.matmul %22, %24, %cst_31 {dimension_numbers = #tpu.dot_dimension_numbers<[1], [0], [0], [1], [0, 0, 1, 1], [], []>} : vector<16x128xf32>, vector<128x128xf32>, vector<16x128xf32> -> vector<16x128xf32>
    %26 = arith.addf %20, %25 : vector<16x128xf32>
    %cst_32 = arith.constant dense<0.000000e+00> : vector<128xf32>
    %27 = vector.multi_reduction <add>, %26, %cst_32 [0] : vector<16x128xf32> to vector<128xf32>
    %28 = vector.shape_cast %27 : vector<128xf32> to vector<1x128xf32>
    %29 = arith.mulf %26, %26 : vector<16x128xf32>
    %cst_33 = arith.constant dense<0.000000e+00> : vector<128xf32>
    %30 = vector.multi_reduction <add>, %29, %cst_33 [0] : vector<16x128xf32> to vector<128xf32>
    %31 = vector.shape_cast %30 : vector<128xf32> to vector<1x128xf32>
    %32 = tpu.concatenate %28, %31 in 0 : vector<1x128xf32>, vector<1x128xf32> -> vector<2x128xf32>
    %cst_34 = arith.constant dense<0.000000e+00> : vector<2x16xf32>
    %33 = tpu.matmul %32, %0, %cst_34 {dimension_numbers = #tpu.dot_dimension_numbers<[1], [0], [0], [1], [0, 0, 1, 1], [], []>} : vector<2x128xf32>, vector<128x16xf32>, vector<2x16xf32> -> vector<2x16xf32>
    %34 = vector.extract_strided_slice %33 {offsets = [0, 0], sizes = [1, 16], strides = [1, 1]} : vector<2x16xf32> to vector<1x16xf32>
    %35 = vector.extract_strided_slice %33 {offsets = [1, 0], sizes = [1, 16], strides = [1, 1]} : vector<2x16xf32> to vector<1x16xf32>
    %cst_35 = arith.constant 7.812500e-03 : f32
    %36 = vector.broadcast %cst_35 : f32 to vector<1x16xf32>
    %37 = arith.mulf %34, %36 : vector<1x16xf32>
    %cst_36 = arith.constant 7.812500e-03 : f32
    %38 = vector.broadcast %cst_36 : f32 to vector<1x16xf32>
    %39 = arith.mulf %35, %38 : vector<1x16xf32>
    %40 = arith.mulf %37, %37 : vector<1x16xf32>
    %41 = arith.subf %39, %40 : vector<1x16xf32>
    %c0_37 = arith.constant 0 : index
    %c0_38 = arith.constant 0 : index
    %42 = vector.load %arg3[%c0_37, %c0_38] : memref<1x16xf32, #tpu.memory_space<vmem>>, vector<1x16xf32>
    %cst_39 = arith.constant 9.99999974E-6 : f32
    %43 = vector.broadcast %cst_39 : f32 to vector<1x16xf32>
    %44 = arith.addf %41, %43 : vector<1x16xf32>
    %45 = math.rsqrt %44 : vector<1x16xf32>
    %46 = arith.mulf %42, %45 : vector<1x16xf32>
    %c0_40 = arith.constant 0 : index
    %c0_41 = arith.constant 0 : index
    %47 = vector.load %arg4[%c0_40, %c0_41] : memref<1x16xf32, #tpu.memory_space<vmem>>, vector<1x16xf32>
    %48 = arith.mulf %37, %46 : vector<1x16xf32>
    %49 = arith.subf %47, %48 : vector<1x16xf32>
    %cst_42 = arith.constant dense<0.000000e+00> : vector<1x128xf32>
    %50 = tpu.matmul %46, %1, %cst_42 {dimension_numbers = #tpu.dot_dimension_numbers<[1], [0], [0], [1], [0, 0, 1, 1], [], []>} : vector<1x16xf32>, vector<16x128xf32>, vector<1x128xf32> -> vector<1x128xf32>
    %cst_43 = arith.constant dense<0.000000e+00> : vector<1x128xf32>
    %51 = tpu.matmul %49, %1, %cst_43 {dimension_numbers = #tpu.dot_dimension_numbers<[1], [0], [0], [1], [0, 0, 1, 1], [], []>} : vector<1x16xf32>, vector<16x128xf32>, vector<1x128xf32> -> vector<1x128xf32>
    %52 = vector.broadcast %50 : vector<1x128xf32> to vector<16x128xf32>
    %53 = arith.mulf %26, %52 : vector<16x128xf32>
    %54 = vector.broadcast %51 : vector<1x128xf32> to vector<16x128xf32>
    %55 = arith.addf %53, %54 : vector<16x128xf32>
    %cst_44 = arith.constant 0.000000e+00 : f32
    %56 = vector.broadcast %cst_44 : f32 to vector<16x128xf32>
    %57 = arith.maximumf %55, %56 : vector<16x128xf32>
    %58 = vector.shape_cast %57 : vector<16x128xf32> to vector<2x8x128xf32>
    %c0_45 = arith.constant 0 : index
    %c1_46 = arith.constant 1 : index
    %c0_47 = arith.constant 0 : index
    %59 = vector.load %arg15[%c0_45, %c1_46, %c0_47] : memref<2x10x128xf32, #tpu.memory_space<vmem>>, vector<2x8x128xf32>
    tpu.vector_store %arg15[%c0_45, %c1_46, %c0_47], %58 {strides = array<i32>} : memref<2x10x128xf32, #tpu.memory_space<vmem>>, vector<2x8x128xf32>,
    %cst_48 = arith.constant 0.000000e+00 : f32
    %60 = vector.broadcast %cst_48 : f32 to vector<16x128xf32>
    %c0_49 = arith.constant 0 : index
    %c0_50 = arith.constant 0 : index
    %c0_51 = arith.constant 0 : index
    %61 = vector.load %arg15[%c0_49, %c0_50, %c0_51] : memref<2x10x128xf32, #tpu.memory_space<vmem>>, vector<2x8x128xf32>
    %62 = vector.shape_cast %61 : vector<2x8x128xf32> to vector<16x128xf32>
    %c0_52 = arith.constant 0 : index
    %c0_53 = arith.constant 0 : index
    %c0_54 = arith.constant 0 : index
    %63 = vector.load %arg5[%c0_52, %c0_53, %c0_54] : memref<3x128x128xf32, #tpu.memory_space<vmem>>, vector<1x128x128xf32>
    %64 = vector.shape_cast %63 : vector<1x128x128xf32> to vector<128x128xf32>
    %cst_55 = arith.constant dense<0.000000e+00> : vector<16x128xf32>
    %65 = tpu.matmul %62, %64, %cst_55 {dimension_numbers = #tpu.dot_dimension_numbers<[1], [0], [0], [1], [0, 0, 1, 1], [], []>} : vector<16x128xf32>, vector<128x128xf32>, vector<16x128xf32> -> vector<16x128xf32>
    %66 = arith.addf %60, %65 : vector<16x128xf32>
    %c0_56 = arith.constant 0 : index
    %c1_57 = arith.constant 1 : index
    %c0_58 = arith.constant 0 : index
    %67 = vector.load %arg15[%c0_56, %c1_57, %c0_58] : memref<2x10x128xf32, #tpu.memory_space<vmem>>, vector<2x8x128xf32>
    %68 = vector.shape_cast %67 : vector<2x8x128xf32> to vector<16x128xf32>
    %c1_59 = arith.constant 1 : index
    %c0_60 = arith.constant 0 : index
    %c0_61 = arith.constant 0 : index
    %69 = vector.load %arg5[%c1_59, %c0_60, %c0_61] : memref<3x128x128xf32, #tpu.memory_space<vmem>>, vector<1x128x128xf32>
    %70 = vector.shape_cast %69 : vector<1x128x128xf32> to vector<128x128xf32>
    %cst_62 = arith.constant dense<0.000000e+00> : vector<16x128xf32>
    %71 = tpu.matmul %68, %70, %cst_62 {dimension_numbers = #tpu.dot_dimension_numbers<[1], [0], [0], [1], [0, 0, 1, 1], [], []>} : vector<16x128xf32>, vector<128x128xf32>, vector<16x128xf32> -> vector<16x128xf32>
    %72 = arith.addf %66, %71 : vector<16x128xf32>
    %c0_63 = arith.constant 0 : index
    %c2_64 = arith.constant 2 : index
    %c0_65 = arith.constant 0 : index
    %73 = vector.load %arg15[%c0_63, %c2_64, %c0_65] : memref<2x10x128xf32, #tpu.memory_space<vmem>>, vector<2x8x128xf32>
    %74 = vector.shape_cast %73 : vector<2x8x128xf32> to vector<16x128xf32>
    %c2_66 = arith.constant 2 : index
    %c0_67 = arith.constant 0 : index
    %c0_68 = arith.constant 0 : index
    %75 = vector.load %arg5[%c2_66, %c0_67, %c0_68] : memref<3x128x128xf32, #tpu.memory_space<vmem>>, vector<1x128x128xf32>
    %76 = vector.shape_cast %75 : vector<1x128x128xf32> to vector<128x128xf32>
    %cst_69 = arith.constant dense<0.000000e+00> : vector<16x128xf32>
    %77 = tpu.matmul %74, %76, %cst_69 {dimension_numbers = #tpu.dot_dimension_numbers<[1], [0], [0], [1], [0, 0, 1, 1], [], []>} : vector<16x128xf32>, vector<128x128xf32>, vector<16x128xf32> -> vector<16x128xf32>
    %78 = arith.addf %72, %77 : vector<16x128xf32>
    %79 = vector.shape_cast %78 : vector<16x128xf32> to vector<2x8x128xf32>
    %cst_70 = arith.constant dense<0.000000e+00> : vector<2x128xf32>
    %80 = vector.multi_reduction <add>, %79, %cst_70 [1] : vector<2x8x128xf32> to vector<2x128xf32>
    %81 = arith.mulf %78, %78 : vector<16x128xf32>
    %cst_71 = arith.constant dense<0.000000e+00> : vector<128xf32>
    %82 = vector.multi_reduction <add>, %81, %cst_71 [0] : vector<16x128xf32> to vector<128xf32>
    %83 = vector.shape_cast %82 : vector<128xf32> to vector<1x128xf32>
    %84 = tpu.concatenate %80, %83 in 0 : vector<2x128xf32>, vector<1x128xf32> -> vector<3x128xf32>
    %cst_72 = arith.constant dense<0.000000e+00> : vector<3x16xf32>
    %85 = tpu.matmul %84, %0, %cst_72 {dimension_numbers = #tpu.dot_dimension_numbers<[1], [0], [0], [1], [0, 0, 1, 1], [], []>} : vector<3x128xf32>, vector<128x16xf32>, vector<3x16xf32> -> vector<3x16xf32>
    %86 = vector.extract_strided_slice %85 {offsets = [0, 0], sizes = [2, 16], strides = [1, 1]} : vector<3x16xf32> to vector<2x16xf32>
    %cst_73 = arith.constant dense<0.000000e+00> : vector<16xf32>
    %87 = vector.multi_reduction <add>, %86, %cst_73 [0] : vector<2x16xf32> to vector<16xf32>
    %88 = vector.shape_cast %87 : vector<16xf32> to vector<1x16xf32>
    %89 = vector.extract_strided_slice %85 {offsets = [2, 0], sizes = [1, 16], strides = [1, 1]} : vector<3x16xf32> to vector<1x16xf32>
    %cst_74 = arith.constant 7.812500e-03 : f32
    %90 = vector.broadcast %cst_74 : f32 to vector<1x16xf32>
    %91 = arith.mulf %88, %90 : vector<1x16xf32>
    %cst_75 = arith.constant 7.812500e-03 : f32
    %92 = vector.broadcast %cst_75 : f32 to vector<1x16xf32>
    %93 = arith.mulf %89, %92 : vector<1x16xf32>
    %94 = arith.mulf %91, %91 : vector<1x16xf32>
    %95 = arith.subf %93, %94 : vector<1x16xf32>
    %c0_76 = arith.constant 0 : index
    %c0_77 = arith.constant 0 : index
    %96 = vector.load %arg6[%c0_76, %c0_77] : memref<1x16xf32, #tpu.memory_space<vmem>>, vector<1x16xf32>
    %cst_78 = arith.constant 9.99999974E-6 : f32
    %97 = vector.broadcast %cst_78 : f32 to vector<1x16xf32>
    %98 = arith.addf %95, %97 : vector<1x16xf32>
    %99 = math.rsqrt %98 : vector<1x16xf32>
    %100 = arith.mulf %96, %99 : vector<1x16xf32>
    %c0_79 = arith.constant 0 : index
    %c0_80 = arith.constant 0 : index
    %101 = vector.load %arg7[%c0_79, %c0_80] : memref<1x16xf32, #tpu.memory_space<vmem>>, vector<1x16xf32>
    %102 = arith.mulf %91, %100 : vector<1x16xf32>
    %103 = arith.subf %101, %102 : vector<1x16xf32>
    %cst_81 = arith.constant 1.562500e-02 : f32
    %104 = vector.broadcast %cst_81 : f32 to vector<2x16xf32>
    %105 = arith.mulf %86, %104 : vector<2x16xf32>
    %106 = vector.broadcast %100 : vector<1x16xf32> to vector<2x16xf32>
    %107 = arith.mulf %105, %106 : vector<2x16xf32>
    %108 = vector.broadcast %103 : vector<1x16xf32> to vector<2x16xf32>
    %109 = arith.addf %107, %108 : vector<2x16xf32>
    %c0_82 = arith.constant 0 : index
    %c0_83 = arith.constant 0 : index
    %110 = vector.load %arg8[%c0_82, %c0_83] : memref<16x4xf32, #tpu.memory_space<vmem>>, vector<16x4xf32>
    %cst_84 = arith.constant dense<0.000000e+00> : vector<2x4xf32>
    %111 = tpu.matmul %109, %110, %cst_84 {dimension_numbers = #tpu.dot_dimension_numbers<[1], [0], [0], [1], [0, 0, 1, 1], [], []>} : vector<2x16xf32>, vector<16x4xf32>, vector<2x4xf32> -> vector<2x4xf32>
    %c0_85 = arith.constant 0 : index
    %c0_86 = arith.constant 0 : index
    %112 = vector.load %arg9[%c0_85, %c0_86] : memref<1x4xf32, #tpu.memory_space<vmem>>, vector<1x4xf32>
    %113 = vector.broadcast %112 : vector<1x4xf32> to vector<2x4xf32>
    %114 = arith.addf %111, %113 : vector<2x4xf32>
    %cst_87 = arith.constant 0.000000e+00 : f32
    %115 = vector.broadcast %cst_87 : f32 to vector<2x4xf32>
    %116 = arith.maximumf %114, %115 : vector<2x4xf32>
    %c0_88 = arith.constant 0 : index
    %c0_89 = arith.constant 0 : index
    %117 = vector.load %arg10[%c0_88, %c0_89] : memref<4x16xf32, #tpu.memory_space<vmem>>, vector<4x16xf32>
    %cst_90 = arith.constant dense<0.000000e+00> : vector<2x16xf32>
    %118 = tpu.matmul %116, %117, %cst_90 {dimension_numbers = #tpu.dot_dimension_numbers<[1], [0], [0], [1], [0, 0, 1, 1], [], []>} : vector<2x4xf32>, vector<4x16xf32>, vector<2x16xf32> -> vector<2x16xf32>
    %c0_91 = arith.constant 0 : index
    %c0_92 = arith.constant 0 : index
    %119 = vector.load %arg11[%c0_91, %c0_92] : memref<1x16xf32, #tpu.memory_space<vmem>>, vector<1x16xf32>
    %120 = vector.broadcast %119 : vector<1x16xf32> to vector<2x16xf32>
    %121 = arith.addf %118, %120 : vector<2x16xf32>
    %122 = arith.negf %121 : vector<2x16xf32>
    %123 = math.exp %122 : vector<2x16xf32>
    %cst_93 = arith.constant 1.000000e+00 : f32
    %124 = vector.broadcast %cst_93 : f32 to vector<2x16xf32>
    %125 = arith.addf %124, %123 : vector<2x16xf32>
    %126 = arith.divf %124, %125 : vector<2x16xf32>
    %127 = vector.broadcast %100 : vector<1x16xf32> to vector<2x16xf32>
    %128 = arith.mulf %127, %126 : vector<2x16xf32>
    %cst_94 = arith.constant dense<0.000000e+00> : vector<2x128xf32>
    %129 = tpu.matmul %128, %1, %cst_94 {dimension_numbers = #tpu.dot_dimension_numbers<[1], [0], [0], [1], [0, 0, 1, 1], [], []>} : vector<2x16xf32>, vector<16x128xf32>, vector<2x128xf32> -> vector<2x128xf32>
    %130 = vector.broadcast %103 : vector<1x16xf32> to vector<2x16xf32>
    %131 = arith.mulf %130, %126 : vector<2x16xf32>
    %cst_95 = arith.constant dense<0.000000e+00> : vector<2x128xf32>
    %132 = tpu.matmul %131, %1, %cst_95 {dimension_numbers = #tpu.dot_dimension_numbers<[1], [0], [0], [1], [0, 0, 1, 1], [], []>} : vector<2x16xf32>, vector<16x128xf32>, vector<2x128xf32> -> vector<2x128xf32>
    %133 = vector.shape_cast %129 : vector<2x128xf32> to vector<2x1x128xf32>
    %134 = vector.broadcast %133 : vector<2x1x128xf32> to vector<2x8x128xf32>
    %135 = arith.mulf %79, %134 : vector<2x8x128xf32>
    %136 = vector.shape_cast %132 : vector<2x128xf32> to vector<2x1x128xf32>
    %137 = vector.broadcast %136 : vector<2x1x128xf32> to vector<2x8x128xf32>
    %138 = arith.addf %135, %137 : vector<2x8x128xf32>
    %139 = vector.shape_cast %138 : vector<2x8x128xf32> to vector<16x128xf32>
    %140 = arith.addf %139, %5 : vector<16x128xf32>
    %cst_96 = arith.constant 0.000000e+00 : f32
    %141 = vector.broadcast %cst_96 : f32 to vector<16x128xf32>
    %142 = arith.maximumf %140, %141 : vector<16x128xf32>
    %c0_97 = arith.constant 0 : index
    %c0_98 = arith.constant 0 : index
    %c0_99 = arith.constant 0 : index
    %143 = vector.load %arg14[%c0_97, %c0_98, %c0_99] : memref<1x16x128xf32, #tpu.memory_space<vmem>>, vector<1x16x128xf32>
    %144 = vector.shape_cast %143 : vector<1x16x128xf32> to vector<16x128xf32>
    %145 = vector.shape_cast %142 : vector<16x128xf32> to vector<1x16x128xf32>
    tpu.vector_store %arg14[%c0_97, %c0_98, %c0_99], %145 {strides = array<i32>} : memref<1x16x128xf32, #tpu.memory_space<vmem>>, vector<1x16x128xf32>,
    return
  }
  func.func @transform_0(%arg0: i32) -> (i32, i32, i32) {
    %c0_i32 = arith.constant 0 : i32
    %c0_i32_0 = arith.constant 0 : i32
    %c0_i32_1 = arith.constant 0 : i32
    return %arg0, %c0_i32, %c0_i32_0 : i32, i32, i32
  }
  func.func @transform_1(%arg0: i32) -> (i32, i32, i32) {
    %c0_i32 = arith.constant 0 : i32
    %c0_i32_0 = arith.constant 0 : i32
    %c0_i32_1 = arith.constant 0 : i32
    %c0_i32_2 = arith.constant 0 : i32
    return %c0_i32, %c0_i32_0, %c0_i32_1 : i32, i32, i32
  }
  func.func @transform_2(%arg0: i32) -> (i32, i32) {
    %c0_i32 = arith.constant 0 : i32
    %c0_i32_0 = arith.constant 0 : i32
    %c0_i32_1 = arith.constant 0 : i32
    return %c0_i32, %c0_i32_0 : i32, i32
  }
  func.func @transform_3(%arg0: i32) -> (i32, i32) {
    %c0_i32 = arith.constant 0 : i32
    %c0_i32_0 = arith.constant 0 : i32
    %c0_i32_1 = arith.constant 0 : i32
    return %c0_i32, %c0_i32_0 : i32, i32
  }
  func.func @transform_4(%arg0: i32) -> (i32, i32, i32) {
    %c0_i32 = arith.constant 0 : i32
    %c0_i32_0 = arith.constant 0 : i32
    %c0_i32_1 = arith.constant 0 : i32
    %c0_i32_2 = arith.constant 0 : i32
    return %c0_i32, %c0_i32_0, %c0_i32_1 : i32, i32, i32
  }
  func.func @transform_5(%arg0: i32) -> (i32, i32) {
    %c0_i32 = arith.constant 0 : i32
    %c0_i32_0 = arith.constant 0 : i32
    %c0_i32_1 = arith.constant 0 : i32
    return %c0_i32, %c0_i32_0 : i32, i32
  }
  func.func @transform_6(%arg0: i32) -> (i32, i32) {
    %c0_i32 = arith.constant 0 : i32
    %c0_i32_0 = arith.constant 0 : i32
    %c0_i32_1 = arith.constant 0 : i32
    return %c0_i32, %c0_i32_0 : i32, i32
  }
  func.func @transform_7(%arg0: i32) -> (i32, i32) {
    %c0_i32 = arith.constant 0 : i32
    %c0_i32_0 = arith.constant 0 : i32
    %c0_i32_1 = arith.constant 0 : i32
    return %c0_i32, %c0_i32_0 : i32, i32
  }
  func.func @transform_8(%arg0: i32) -> (i32, i32) {
    %c0_i32 = arith.constant 0 : i32
    %c0_i32_0 = arith.constant 0 : i32
    %c0_i32_1 = arith.constant 0 : i32
    return %c0_i32, %c0_i32_0 : i32, i32
  }
  func.func @transform_9(%arg0: i32) -> (i32, i32) {
    %c0_i32 = arith.constant 0 : i32
    %c0_i32_0 = arith.constant 0 : i32
    %c0_i32_1 = arith.constant 0 : i32
    return %c0_i32, %c0_i32_0 : i32, i32
  }
  func.func @transform_10(%arg0: i32) -> (i32, i32) {
    %c0_i32 = arith.constant 0 : i32
    %c0_i32_0 = arith.constant 0 : i32
    %c0_i32_1 = arith.constant 0 : i32
    return %c0_i32, %c0_i32_0 : i32, i32
  }
  func.func @transform_11(%arg0: i32) -> (i32, i32) {
    %c0_i32 = arith.constant 0 : i32
    %c0_i32_0 = arith.constant 0 : i32
    %c0_i32_1 = arith.constant 0 : i32
    return %c0_i32, %c0_i32_0 : i32, i32
  }
  func.func @transform_12(%arg0: i32) -> (i32, i32) {
    %c0_i32 = arith.constant 0 : i32
    %c0_i32_0 = arith.constant 0 : i32
    %c0_i32_1 = arith.constant 0 : i32
    return %c0_i32, %c0_i32_0 : i32, i32
  }
  func.func @transform_13(%arg0: i32) -> (i32, i32, i32) {
    %c0_i32 = arith.constant 0 : i32
    %c0_i32_0 = arith.constant 0 : i32
    %c0_i32_1 = arith.constant 0 : i32
    return %arg0, %c0_i32, %c0_i32_0 : i32, i32, i32
  }
}

</mosaic_0001>

<bundles_post_ra>
// kernel: tpu_custom_call.1
= control target key start
LH: loop header
LB: loop body
LE: loop exit
PB: predicated region body
PF: predicated region fallthrough
CT: control target
= control target key end

     0   :  { %18 = vsyncpa [#allocation4], 0  ;;  %s3202_s0 = inlined_call_operand.vmem [shape: f32[2,16,128], index: 0, kind: input, shape index: {}]   ;;  %s3203_s1 = inlined_call_operand.hbm [shape: f32[3,128,128], index: 1, kind: input, shape index: {}]   ;;  %s3204_s2 = inlined_call_operand.vmem [shape: f32[1,16], index: 2, kind: input, shape index: {}]   ;;  %s3205_s3 = inlined_call_operand.vmem [shape: f32[1,16], index: 3, kind: input, shape index: {}]   ;;  %s3206_s4 = inlined_call_operand.hbm [shape: f32[3,128,128], index: 4, kind: input, shape index: {}]   ;;  %s3207_s5 = inlined_call_operand.vmem [shape: f32[1,16], index: 5, kind: input, shape index: {}]   ;;  %s3208_s6 = inlined_call_operand.vmem [shape: f32[1,16], index: 6, kind: input, shape index: {}]   ;;  %s3209_s7 = inlined_call_operand.vmem [shape: f32[16,4], index: 7, kind: input, shape index: {}]   ;;  %s3210_s8 = inlined_call_operand.vmem [shape: f32[1,4], index: 8, kind: input, shape index: {}]   ;;  %s3211_s9 = inlined_call_operand.vmem [shape: f32[4,16], index: 9, kind: input, shape index: {}]   ;;  %s3212_s10 = inlined_call_operand.vmem [shape: f32[1,16], index: 10, kind: input, shape index: {}]   ;;  %s3213_s11 = inlined_call_operand.vmem [shape: f32[128,16], index: 11, kind: input, shape index: {}]   ;;  %s3214_s12 = inlined_call_operand.vmem [shape: f32[16,128], index: 12, kind: input, shape index: {}]   ;;  %s3215_s13 = inlined_call_operand.hbm [shape: f32[2,16,128], index: 13, kind: output, shape index: {}]  }
   0x1   :  { %19 = vsyncpa [#allocation7], 0 }
   0x2   :  { %20 = vsyncpa [#allocation5], 0 }
   0x3   :  { %22 = vsyncpa [#allocation5 + $0x1], 0  ;;  %s2772_s25 = smov 0   ;;  %s2774_s26 = smov 0  }
   0x4   :  { %s2776_s27 = smov 0   ;;  %s2778_s28 = smov 0  }
   0x5 LB: > { %3220 = sst [smem:[#allocation12_spill]] %s2686_s27  ;;  %s2793_s29 = sadd.s32 4294967295, %s2690_s28   ;;  %s2690_s28 = sphi %s2778_s28, %s3232_s28   ;;  %s2686_s27 = sphi %s2776_s27, %s3234_s27   ;;  %s2682_s26 = sphi %s2774_s26, %s3236_s26   ;;  %s2678_s25 = sphi %s2772_s25, %s3235_s25  }
   0x6   : > { %s1988_s30 = sadd.s32 4294967294, %s2690_s28   ;;  %s2797_s14 = sadd.s32 1, %s2690_s28  }
   0x7   : > { %3221 = sst [smem:[#allocation13_spill]] %s2797_s14  ;;  %s313_s15 = sadd.s32 1, %s2686_s27 }
   0x8   : > { %s310_s16 = ssub.s32 %s2690_s28, %s2797_s14  ;;  %p323_p0 = scmp.ne.s32.totalorder %s2686_s27, %s2682_s26 }
   0x9   : > { %p311_p1 = scmp.eq.s32.totalorder %s310_s16, 0  ;;  %p324_p2 = scmp.eq.s32.totalorder %s2793_s29, 1 }
   0xa   : > { %p329_p3 = scmp.ne.s32.totalorder %s2682_s26, %s2678_s25  ;;  %p330_p4 = scmp.eq.s32.totalorder %s1988_s30, 1 }
   0xb   : > { %s2808_s17 = scalar_select %p311_p1, %s2686_s27, %s313_s15  }
   0xc   : > { %p2810_p5 = por %p324_p2, %p323_p0  ;;  %p2814_p6 = por %p330_p4, %p329_p3 }
   0xd   : > { %3222 = sst [smem:[#allocation14_spill]] %s2808_s17  ;;  %p1989_p7 = scmp.ge.s32.totalorder %s2690_s28, 1 }
   0xe   : > { %s3224_s19 = scalar_select %p2814_p6, 1, 0 }
   0xf   : > { %p337_p8 = scmp.lt.s32.totalorder %s2690_s28, 3  ;;  %p3217_p9 = scmp.eq.s32.totalorder %s2793_s29, 0 }
  0x10   : > { %s2692_s21 = smov [#allocation3]   ;;  %s2693_s24 = smov [#allocation6]  }
  0x11   : > { %p2821_p10 = pnand %p1989_p7, %p337_p8  ;;  %s349_s22 = sshll.u32 %s2692_s21, 4  ;;  %s350_s22 = int_to_ptr.vmem [resolvable:$true] %s349_s22 }
  0x12   : > { %s368_s30 = sshll.u32 %s2693_s24, 4  ;;  %s2581_s15 = scalar_lea.vmem %s350_s22, 6144  ;;  %s369_s30 = int_to_ptr.vmem [resolvable:$true] %s368_s30 }
  0x13   : > { %p2505_p11 = pneg %p2821_p10  ;;  %p2582_p0 = scmp.ne.s32.totalorder %s350_s22, %s2581_s15 }
  0x14   : > { %p2589_p3 = scmp.lt.s32.totalorder %s350_s22, %s350_s22  ;;  %p2590_p4 = scmp.lt.s32.totalorder %s2581_s15, %s2581_s15 }
  0x15   : > { %p2829_p12 = pnand %p3217_p9, %p2505_p11 }
  0x16   : > { %p2591_p7 = por %p2590_p4, %p2589_p3 }
  0x17   : > { %p2572_p13 = pneg %p2829_p12 }
  0x19   : > { %p2584_p1 = pnand %p2582_p0, %p2572_p13 }
  0x1b   : > { %p2585_p2 = pneg %p2584_p1 }
  0x1d   : > { %p2592_p8 = pnand %p2591_p7, %p2585_p2 }
  0x1f   : > { %2595 = shalt.err (!%p2592_p8)
}
  0x20   : > { %s2694_s16 = smov 128   ;;  %s2695_s21 = smov 8  }
  0x21   : > { %2508 = dma.hbm_to_vmem [thread:$0]  (!%p2829_p12), %s3203_s1, 6144, %s350_s22, [#allocation4], %s2694_s16, %s2694_s16, %s2695_s21  }
  0x22   : > { %s2607_s27 = scalar_lea.vmem %s369_s30, 6144  ;;  %p2615_p9 = scmp.lt.s32.totalorder %s369_s30, %s369_s30 }
  0x23   : > { %p2608_p11 = scmp.ne.s32.totalorder %s369_s30, %s2607_s27  ;;  %p2616_p6 = scmp.lt.s32.totalorder %s2607_s27, %s2607_s27 }
  0x25   : > { %p2610_p0 = pnand %p2608_p11, %p2572_p13  ;;  %p2617_p3 = por %p2616_p6, %p2615_p9 }
  0x27   : > { %p2611_p1 = pneg %p2610_p0 }
  0x29   : > { %p2618_p2 = pnand %p2617_p3, %p2611_p1 }
  0x2b   : > { %2621 = shalt.err (!%p2618_p2)
}
  0x2c   : > { %2511 = dma.hbm_to_vmem [thread:$0]  (!%p2829_p12), %s3206_s4, 6144, %s369_s30, [#allocation7], %s2694_s16, %s2694_s16, %s2695_s21  }
  0x2d   : > { %416 = sbr.rel (%p2821_p10) target bundleno = 1904 (0x770), region = 72  ;;  %p3227_p4 = scmp.eq.s32.totalorder (!%p2821_p10), %s2793_s29, 0 }
  0x32   : > { %2665 = dma.done.wait (%p3227_p4), [#allocation4], 6144   ;;  %p3228_p13 = pmov %p3227_p4 }
  0x33   : > { %p3229_p7 = pmov %p3227_p4 }
  0x34   : > { %2667 = vsyncadd (%p3228_p13), [#allocation4], 4294961152 }
  0x35   : > { %2669 = dma.done.wait (%p3229_p7), [#allocation7], 6144   ;;  %p3230_p6 = pmov %p3227_p4 }
  0x36   : > { %v2696_v0 = vmov 0.0   ;;  %p464_p9 = scmp.lt.s32.totalorder %s2793_s29, 1  ;;  %v531_v1 = vld [vmem:[#allocation3 + $0xf8] sm:$0xff]  ;;  %v530_v3 = vld [vmem:[#allocation3 + $0xf0] sm:$0xff]  ;;  %v529_v5 = vld [vmem:[#allocation3 + $0xe8] sm:$0xff]  ;;  %vm2697_vm0 = vmmov 0  }
  0x37   : > { %2671 = vsyncadd (%p3230_p6), [#allocation7], 4294961152  ;;  %487 = vst [vmem:[#allocation2] sm:$0xff] %v2696_v0  ;;  %v512_v2 = vld [vmem:[#allocation3 + $0x78] sm:$0xff]  ;;  %2175 = vmatprep.subr.mxu0 %v531_v1  ;;  %v511_v4 = vld [vmem:[#allocation3 + $0x70] sm:$0xff]  ;;  %vm794_vm1 = vcmask 1040384  }
  0x38   : > { %488 = vst [vmem:[#allocation2 + $0x8] sm:$0x3] %v2696_v0  ;;  %489 = vst [vmem:[#allocation2 + $0x10] sm:$0xff] %v2696_v0  ;;  %s465_s27 = scalar_select %p464_p9, %s2793_s29, 1  ;;  %2210 = vmatprep.subr.mxu1 %v512_v2  ;;  %2176 = vmatpush3.msra.mxu0 %v531_v1  ;;  %v510_v6 = vld [vmem:[#allocation3 + $0x68] sm:$0xff]  ;;  %v528_v7 = vld [vmem:[#allocation3 + $0xe0] sm:$0xff] }
  0x39   : > { %490 = vst [vmem:[#allocation2 + $0x18] sm:$0x3] %v2696_v0  ;;  %2211 = vmatpush3.msra.mxu1 %v512_v2  ;;  %2177 = vmatprep.subr.mxu0 %v530_v3  ;;  %v509_v8 = vld [vmem:[#allocation3 + $0x60] sm:$0xff]  ;;  %v527_v9 = vld [vmem:[#allocation3 + $0xd8] sm:$0xff]  ;;  %v526_v11 = vld [vmem:[#allocation3 + $0xd0] sm:$0xff]  ;;  %vm896_vm2 = vcmask 130048  }
  0x3a   : > { %2212 = vmatprep.subr.mxu1 %v511_v4  ;;  %2178 = vmatpush3.msra.mxu0 %v530_v3  ;;  %s2014_s14 = sshll.u32 %s465_s27, 4  ;;  %v508_v10 = vld [vmem:[#allocation3 + $0x58] sm:$0xff]  ;;  %v507_v12 = vld [vmem:[#allocation3 + $0x50] sm:$0xff]  ;;  %v525_v13 = vld [vmem:[#allocation3 + $0xc8] sm:$0xff]  ;;  %vm1365_vm3 = vcmask 1041409   ;;  %vm1368_vm4 = vcmask 1041408  }
  0x3b   : > { %2213 = vmatpush3.msra.mxu1 %v511_v4  ;;  %2179 = vmatprep.subr.mxu0 %v529_v5  ;;  %s468_s22 = scalar_lea.vmem %s3202_s0, %s2014_s14  ;;  %v506_v14 = vld [vmem:[#allocation3 + $0x48] sm:$0xff]  ;;  %v524_v17 = vld [vmem:[#allocation3 + $0xc0] sm:$0xff]  ;;  %v523_v19 = vld [vmem:[#allocation3 + $0xb8] sm:$0xff]  ;;  %vm1440_vm5 = vcmask 123904   ;;  %vm1586_vm6 = vcmask 1043456   ;;  %vm1582_vm7 = vcmask 31744  }
  0x3c   : > { %2214 = vmatprep.subr.mxu1 %v510_v6  ;;  %2180 = vmatpush3.msra.mxu0 %v529_v5  ;;  %v2870_v15 = vld [vmem:[%s468_s22] sm:$0xff]  ;;  %v2873_v16 = vld [vmem:[%s468_s22 + $0x8] sm:$0xff]  ;;  %v504_v20 = vld [vmem:[#allocation3 + $0x38] sm:$0xff]  ;;  %s461_s22 = sand.u32 1, %s2682_s26   ;;  %s2015_s30 = sshll.u32 %s2793_s29, 8 }
  0x3d   : > { %2215 = vmatpush3.msra.mxu1 %v510_v6  ;;  %2181 = vmatprep.subr.mxu0 %v528_v7  ;;  %493 = vst [vmem:[#allocation2 + $0x1] sm:$0xff] %v2870_v15  ;;  %v505_v18 = vld [vmem:[#allocation3 + $0x40] sm:$0xff]  ;;  %494 = vst [vmem:[#allocation2 + $0x11] sm:$0xff] %v2873_v16  ;;  %v522_v21 = vld [vmem:[#allocation3 + $0xb0] sm:$0xff]  ;;  %s1996_s23 = sshll.u32 %s461_s22, 4  ;;  %s3158_s27 = scalar_lea.hbm %s3215_s13, %s2015_s30 }
  0x3e   : > { %2216 = vmatprep.subr.mxu1 %v509_v8  ;;  %2182 = vmatpush3.msra.mxu0 %v528_v7  ;;  %v503_v22 = vld [vmem:[#allocation3 + $0x30] sm:$0xff]  ;;  %v521_v23 = vld [vmem:[#allocation3 + $0xa8] sm:$0xff]  ;;  %v520_v25 = vld [vmem:[#allocation3 + $0xa0] sm:$0xff]  ;;  %s463_s16 = scalar_lea.vmem [#allocation8], %s1996_s23  ;;  %s3162_s14 = scalar_lea.sflag [#allocation5], %s461_s22 }
  0x3f   : > { %2217 = vmatpush3.msra.mxu1 %v509_v8  ;;  %2183 = vmatprep.subr.mxu0 %v527_v9  ;;  %v502_v24 = vld [vmem:[#allocation3 + $0x28] sm:$0xff]  ;;  %v501_v26 = vld [vmem:[#allocation3 + $0x20] sm:$0xff]  ;;  %v519_v27 = vld [vmem:[#allocation3 + $0x98] sm:$0xff]  ;;  %s1904_s21 = sshll.u32 %s463_s16, 4  ;;  %s2699_s17 = smov [#allocation8]   ;;  %s3160_s21 = int_to_ptr.vmem [resolvable:$true] %s1904_s21 }
  0x40   : > { %2218 = vmatprep.subr.mxu1 %v508_v10  ;;  %2184 = vmatpush3.msra.mxu0 %v527_v9  ;;  %v500_v28 = vld [vmem:[#allocation3 + $0x18] sm:$0xff]  ;;  %v518_v29 = vld [vmem:[#allocation3 + $0x90] sm:$0xff]  ;;  %v517_v31 = vld [vmem:[#allocation3 + $0x88] sm:$0xff]  ;;  %s2622_s29 = scalar_lea.vmem %s3160_s21, 256  ;;  %s2626_s20 = sshll.u32 %s2699_s17, 4  ;;  %s2627_s20 = int_to_ptr.vmem [resolvable:$false] %s2626_s20 }
  0x41   : > { %2219 = vmatpush3.msra.mxu1 %v508_v10  ;;  %2185 = vmatprep.subr.mxu0 %v526_v11  ;;  %v499_v30 = vld [vmem:[#allocation3 + $0x10] sm:$0xff]  ;;  %v498_v32 = vld [vmem:[#allocation3 + $0x8] sm:$0xff]  ;;  %v516_v33 = vld [vmem:[#allocation3 + $0x80] sm:$0xff]  ;;  %p2623_p10 = scmp.ne.s32.totalorder %s3160_s21, %s2622_s29  ;;  %s2628_s23 = scalar_lea.vmem %s2627_s20, 512 }
  0x42   : > { %2220 = vmatprep.subr.mxu1 %v507_v12  ;;  %2186 = vmatpush3.msra.mxu0 %v526_v11  ;;  %v497_v34 = vld [vmem:[#allocation3] sm:$0xff]  ;;  %v700_v37 = vld [vmem:[#allocation3 + $0x178] sm:$0xff]  ;;  %v699_v39 = vld [vmem:[#allocation3 + $0x170] sm:$0xff]  ;;  %p2629_p11 = scmp.lt.s32.totalorder %s3160_s21, %s2627_s20  ;;  %p2630_p0 = scmp.lt.s32.totalorder %s2628_s23, %s2622_s29 }
  0x43   : > { %2221 = vmatpush3.msra.mxu1 %v507_v12  ;;  %2187 = vmatprep.subr.mxu0 %v525_v13  ;;  %v698_v40 = vld [vmem:[#allocation3 + $0x168] sm:$0xff]  ;;  %v697_v41 = vld [vmem:[#allocation3 + $0x160] sm:$0xff]  ;;  %v696_v42 = vld [vmem:[#allocation3 + $0x158] sm:$0xff]  ;;  %p2624_p12 = pnand %p2623_p10, %p2810_p5 }
  0x44   : > { %2222 = vmatprep.subr.mxu1 %v506_v14  ;;  %2188 = vmatpush3.msra.mxu0 %v525_v13  ;;  %v495_v35 = vld [vmem:[#allocation2] sm:$0xff]  ;;  %v496_v36 = vld [vmem:[#allocation2 + $0x10] sm:$0xff]  ;;  %v694_v44 = vld [vmem:[#allocation3 + $0x148] sm:$0xff]  ;;  %p2631_p1 = por %p2630_p0, %p2629_p11 }
  0x45   : > { %2223 = vmatpush3.msra.mxu1 %v506_v14  ;;  %2189 = vmatprep.subr.mxu0 %v524_v17  ;;  %v682_v38 = vld [vmem:[#allocation2 + $0x2] sm:$0xff]  ;;  %v695_v43 = vld [vmem:[#allocation3 + $0x150] sm:$0xff]  ;;  %v692_v46 = vld [vmem:[#allocation3 + $0x138] sm:$0xff]  ;;  %p2625_p8 = pneg %p2624_p12 }
  0x46   : > { %2224 = vmatprep.subr.mxu1 %v505_v18  ;;  %2190 = vmatpush3.msra.mxu0 %v524_v17  ;;  %v693_v45 = vld [vmem:[#allocation3 + $0x140] sm:$0xff]  ;;  %v691_v47 = vld [vmem:[#allocation3 + $0x130] sm:$0xff]  ;;  %v690_v48 = vld [vmem:[#allocation3 + $0x128] sm:$0xff] }
  0x47   : > { %2225 = vmatpush3.msra.mxu1 %v505_v18  ;;  %2191 = vmatprep.subr.mxu0 %v523_v19  ;;  %v689_v49 = vld [vmem:[#allocation3 + $0x120] sm:$0xff]  ;;  %v688_v50 = vld [vmem:[#allocation3 + $0x118] sm:$0xff]  ;;  %v687_v51 = vld [vmem:[#allocation3 + $0x110] sm:$0xff]  ;;  %p2632_p3 = pnand %p2631_p1, %p2625_p8 }
  0x48   : > { %2226 = vmatprep.subr.mxu1 %v504_v20  ;;  %2192 = vmatpush3.msra.mxu0 %v523_v19  ;;  %v686_v52 = vld [vmem:[#allocation3 + $0x108] sm:$0xff]  ;;  %v685_v53 = vld [vmem:[#allocation3 + $0x100] sm:$0xff]  ;;  %v683_v54 = vld [vmem:[#allocation2 + $0x12] sm:$0xff] }
  0x49   : > { %2227 = vmatpush3.msra.mxu1 %v504_v20  ;;  %2193 = vmatprep.subr.mxu0 %v522_v21  ;;  %v2883_v55 = vld [vmem:[%s3213_s11 + $0x78] sm:$0xff]  ;;  %v2888_v56 = vld [vmem:[%s3213_s11 + $0x70] sm:$0xff]  ;;  %v2895_v57 = vld [vmem:[%s3213_s11 + $0x68] sm:$0xff] }
  0x4a   : > { %2228 = vmatprep.subr.mxu1 %v503_v22  ;;  %2194 = vmatpush3.msra.mxu0 %v522_v21  ;;  %v2902_v58 = vld [vmem:[%s3213_s11 + $0x60] sm:$0xff]  ;;  %v2909_v59 = vld [vmem:[%s3213_s11 + $0x58] sm:$0xff]  ;;  %v2918_v60 = vld [vmem:[%s3213_s11 + $0x50] sm:$0xff] }
  0x4b   : > { %2229 = vmatpush3.msra.mxu1 %v503_v22  ;;  %2195 = vmatprep.subr.mxu0 %v521_v23  ;;  %v2925_v61 = vld [vmem:[%s3213_s11 + $0x48] sm:$0xff]  ;;  %v2932_v62 = vld [vmem:[%s3213_s11 + $0x40] sm:$0xff]  ;;  %v2939_v63 = vld [vmem:[%s3213_s11 + $0x38] sm:$0xff] }
  0x4c   : > { %2230 = vmatprep.subr.mxu1 %v502_v24  ;;  %2196 = vmatpush3.msra.mxu0 %v521_v23  ;;  %v2946_v1 = vld [vmem:[%s3213_s11 + $0x30] sm:$0xff]  ;;  %v2953_v2 = vld [vmem:[%s3213_s11 + $0x28] sm:$0xff]  ;;  %v2960_v3 = vld [vmem:[%s3213_s11 + $0x20] sm:$0xff] }
  0x4d   : > { %2231 = vmatpush3.msra.mxu1 %v502_v24  ;;  %2197 = vmatprep.subr.mxu0 %v520_v25  ;;  %v2966_v4 = vld [vmem:[%s3213_s11 + $0x18] sm:$0xff]  ;;  %v2972_v5 = vld [vmem:[%s3213_s11 + $0x10] sm:$0xff]  ;;  %v2983_v6 = vld [vmem:[%s3213_s11 + $0x8] sm:$0xff] }
  0x4e   : > { %2232 = vmatprep.subr.mxu1 %v501_v26  ;;  %2198 = vmatpush3.msra.mxu0 %v520_v25  ;;  %v2990_v7 = vld [vmem:[%s3213_s11] sm:$0xff] }
  0x4f   : > { %2233 = vmatpush3.msra.mxu1 %v501_v26  ;;  %2199 = vmatprep.subr.mxu0 %v519_v27 }
  0x50   : > { %2234 = vmatprep.subr.mxu1 %v500_v28  ;;  %2200 = vmatpush3.msra.mxu0 %v519_v27 }
  0x51   : > { %2235 = vmatpush3.msra.mxu1 %v500_v28  ;;  %2201 = vmatprep.subr.mxu0 %v518_v29 }
  0x52   : > { %2236 = vmatprep.subr.mxu1 %v499_v30  ;;  %2202 = vmatpush3.msra.mxu0 %v518_v29 }
  0x53   : > { %2237 = vmatpush3.msra.mxu1 %v499_v30  ;;  %2203 = vmatprep.subr.mxu0 %v517_v31 }
  0x54   : > { %2238 = vmatprep.subr.mxu1 %v498_v32  ;;  %2204 = vmatpush3.msra.mxu0 %v517_v31 }
  0x55   : > { %2239 = vmatpush3.msra.mxu1 %v498_v32  ;;  %2205 = vmatprep.subr.mxu0 %v516_v33 }
  0x56   : > { %2240 = vmatprep.subr.mxu1 %v497_v34  ;;  %2206 = vmatpush3.msra.mxu0 %v516_v33 }
  0x57   : > { %2207 = vmatprep.mubr.f32.mxu0 %v2870_v15  ;;  %2241 = vmatpush3.msra.mxu1 %v497_v34 }
  0x58   : > { %2242 = vmatprep.mubr.f32.mxu1 %v495_v35  ;;  %2208 = vmatmul.mubr.f32.vlgmr.msra.gmra.mxu0 %v2873_v16 }
  0x59   : > { %2243 = vmatmul.mubr.f32.vlgmr.msra.gmra.mxu1 %v496_v36  ;;  %2245 = vmatprep.subr.mxu0 %v700_v37 }
  0x5a   : > { %2277 = vmatprep.mubr.f32.mxu0 %v682_v38  ;;  %2246 = vmatpush3.msra.mxu0 %v700_v37  ;;  %v3011_v37 = vld [vmem:[%s3214_s12 + $0x8] sm:$0xff]  ;;  %v3019_v38 = vld [vmem:[%s3214_s12] sm:$0xff] }
  0x5b   : > { %2280 = vmatprep.subr.mxu1 %v2696_v0  ;;  %2247 = vmatprep.subr.mxu0 %v699_v39 }
  0x5c   : > { %2248 = vmatpush3.msra.mxu0 %v699_v39  ;;  %2281 = vmatpush3.msra.mxu1 %v2883_v55  ;;  %v1095_v39 = vld [vmem:[#allocation6 + $0xf8] sm:$0xff] }
  0x5d   : > { %2249 = vmatprep.subr.mxu0 %v698_v40  ;;  %2282 = vmatprep.subr.mxu1 %v2696_v0 }
  0x5e   : > { %2250 = vmatpush3.msra.mxu0 %v698_v40  ;;  %2283 = vmatpush3.msra.mxu1 %v2888_v56  ;;  %v1076_v40 = vld [vmem:[#allocation6 + $0x78] sm:$0xff] }
  0x5f   : > { %2251 = vmatprep.subr.mxu0 %v697_v41  ;;  %2284 = vmatprep.subr.mxu1 %v2696_v0 }
  0x60   : > { %2252 = vmatpush3.msra.mxu0 %v697_v41  ;;  %2285 = vmatpush3.msra.mxu1 %v2895_v57 }
  0x61   : > { %2253 = vmatprep.subr.mxu0 %v696_v42  ;;  %2286 = vmatprep.subr.mxu1 %v2696_v0 }
  0x62   : > { %2254 = vmatpush3.msra.mxu0 %v696_v42  ;;  %2287 = vmatpush3.msra.mxu1 %v2902_v58 }
  0x63   : > { %2255 = vmatprep.subr.mxu0 %v695_v43  ;;  %2288 = vmatprep.subr.mxu1 %v2696_v0 }
  0x64   : > { %2256 = vmatpush3.msra.mxu0 %v695_v43  ;;  %2289 = vmatpush3.msra.mxu1 %v2909_v59 }
  0x65   : > { %2257 = vmatprep.subr.mxu0 %v694_v44  ;;  %2290 = vmatprep.subr.mxu1 %v2696_v0 }
  0x66   : > { %2258 = vmatpush3.msra.mxu0 %v694_v44  ;;  %2291 = vmatpush3.msra.mxu1 %v2918_v60 }
  0x67   : > { %2259 = vmatprep.subr.mxu0 %v693_v45  ;;  %2292 = vmatprep.subr.mxu1 %v2696_v0 }
  0x68   : > { %2260 = vmatpush3.msra.mxu0 %v693_v45  ;;  %2293 = vmatpush3.msra.mxu1 %v2925_v61 }
  0x69   : > { %2261 = vmatprep.subr.mxu0 %v692_v46  ;;  %2294 = vmatprep.subr.mxu1 %v2696_v0 }
  0x6a   : > { %2262 = vmatpush3.msra.mxu0 %v692_v46  ;;  %2295 = vmatpush3.msra.mxu1 %v2932_v62 }
  0x6b   : > { %2263 = vmatprep.subr.mxu0 %v691_v47  ;;  %2296 = vmatprep.subr.mxu1 %v2696_v0 }
  0x6c   : > { %2264 = vmatpush3.msra.mxu0 %v691_v47  ;;  %2297 = vmatpush3.msra.mxu1 %v2939_v63 }
  0x6d   : > { %2265 = vmatprep.subr.mxu0 %v690_v48  ;;  %2298 = vmatprep.subr.mxu1 %v2696_v0 }
  0x6e   : > { %2266 = vmatpush3.msra.mxu0 %v690_v48  ;;  %2299 = vmatpush3.msra.mxu1 %v2946_v1  ;;  %v2698_v48 = vmov 1966171168  }
  0x6f   : > { %2267 = vmatprep.subr.mxu0 %v689_v49  ;;  %2300 = vmatprep.subr.mxu1 %v2696_v0 }
  0x70   : > { %2268 = vmatpush3.msra.mxu0 %v689_v49  ;;  %2301 = vmatpush3.msra.mxu1 %v2953_v2  ;;  %v877_v49 = vunpack.c.l.s4 %v2698_v48  ;;  %v1264_v48 = vld [vmem:[#allocation6 + $0x178] sm:$0xff] }
  0x71   : > { %2269 = vmatprep.subr.mxu0 %v688_v50  ;;  %2302 = vmatprep.subr.mxu1 %v2696_v0 }
  0x72   : > { %2270 = vmatpush3.msra.mxu0 %v688_v50  ;;  %2303 = vmatpush3.msra.mxu1 %v2960_v3  ;;  %v879_v50 = vlaneseq }
  0x73   : > { %2271 = vmatprep.subr.mxu0 %v687_v51  ;;  %2304 = vmatprep.subr.mxu1 %v2696_v0 }
  0x74   : > { %2272 = vmatpush3.msra.mxu0 %v687_v51  ;;  %2312 = vmatprep.mubr.msk.f32.mxu1 %vm2697_vm0, %v2696_v0  ;;  %v878_v51 = vunpack.c.0.s8 %v877_v49  ;;  %v1064_v49 = vld [vmem:[#allocation6 + $0x18] sm:$0xff] }
  0x75   : > { %2273 = vmatprep.subr.mxu0 %v686_v52  ;;  %2305 = vmatpush3.msra.mxu1 %v2966_v4 }
  0x76   : > { %2274 = vmatpush3.msra.mxu0 %v686_v52  ;;  %2306 = vmatprep.subr.mxu1 %v2696_v0  ;;  %v3024_v52 = vshrl.u32 %v879_v50, 7  ;;  %v1063_v50 = vld [vmem:[#allocation6 + $0x10] sm:$0xff] }
  0x77   : > { %2275 = vmatprep.subr.mxu0 %v685_v53  ;;  %2307 = vmatpush3.msra.mxu1 %v2972_v5 }
  0x78   : > { %2276 = vmatpush3.msra.mxu0 %v685_v53  ;;  %2308 = vmatprep.subr.mxu1 %v2696_v0  ;;  %v3027_v53 = vsub.s32 %v878_v51, %v3024_v52  ;;  %v1062_v51 = vld [vmem:[#allocation6 + $0x8] sm:$0xff] }
  0x79   : > { %2278 = vmatmul.mubr.f32.vlgmr.msra.gmra.mxu0 %v683_v54  ;;  %2315 = vmatprep.subr.mxu0 %v2696_v0 }
  0x7a   : > { %2319 = vmatprep.mubr.msk.f32.mxu0 %vm2697_vm0, %v2696_v0  ;;  %2309 = vmatpush3.msra.mxu1 %v2983_v6 }
  0x7b   : > { %2310 = vmatprep.subr.mxu1 %v2696_v0  ;;  %2316 = vmatpush3.msra.mxu0 %v3011_v37 }
  0x7c   : > { %2311 = vmatpush3.msra.mxu1 %v2990_v7  ;;  %2317 = vmatprep.subr.mxu0 %v2696_v0 }
  0x7d   : > { %2322 = vmatprep.subr.mxu1 %v2696_v0  ;;  %2318 = vmatpush3.msra.mxu0 %v3019_v38 }
  0x7e   : > { %2329 = vmatprep.subr.mxu0 %v1095_v39 }
 0x118   : > { %v2209_v8 = vpop.f32.mrf.mxu0 }
 0x119   : > { %v2244_v9 = vpop.f32.mrf.mxu1 }
 0x11a   : > { %v598_v10 = vpop.f32.mrf.mxu0  ;;  %v679_v12 = vadd.f32 %v2244_v9, %v2209_v8 }
 0x11b   : > { %v673_v11 = vpop.f32.mrf.mxu1 }
 0x11c   : > { %v674_v14 = vadd.f32 %v673_v11, %v598_v10  ;;  %v872_v10 = vld [vmem:[%s3204_s2] sm:$0x1] }
 0x139   : > { %v2279_v13 = vpop.f32.mrf.mxu0 }
 0x13a   : > { %v2996_v17 = vadd.f32 %v2279_v13, %v679_v12  ;;  %v893_v13 = vld [vmem:[%s3205_s3] sm:$0x1] }
 0x13b   : > { %v767_v18 = vpop.f32.mrf.mxu0 }
 0x13c   : > { %v2998_v19 = vadd.f32 %v767_v18, %v674_v14  ;;  %v786_v20 = vmul.f32 %v2996_v17, %v2996_v17  ;;  %v1094_v14 = vld [vmem:[#allocation6 + $0xf0] sm:$0xff] }
 0x13e   : > { %v778_v21 = vadd.f32 %v2996_v17, %v2998_v19  ;;  %v785_v22 = vmul.f32 %v2998_v19, %v2998_v19 }
 0x140   : > { %v779_v23 = vrot.slane %v778_v21, 4  ;;  %v787_v24 = vadd.f32 %v786_v20, %v785_v22  ;;  %v1093_v20 = vld [vmem:[#allocation6 + $0xe8] sm:$0xff]  ;;  %v1075_v22 = vld [vmem:[#allocation6 + $0x70] sm:$0xff] }
 0x142   : > { %v780_v25 = vadd.f32 %v779_v23, %v778_v21  ;;  %v788_v26 = vrot.slane %v787_v24, 4  ;;  %v1092_v23 = vld [vmem:[#allocation6 + $0xe0] sm:$0xff] }
 0x144   : > { %v781_v27 = vrot.slane %v780_v25, 2  ;;  %v789_v28 = vadd.f32 %v788_v26, %v787_v24  ;;  %v1074_v24 = vld [vmem:[#allocation6 + $0x68] sm:$0xff]  ;;  %v1073_v26 = vld [vmem:[#allocation6 + $0x60] sm:$0xff] }
 0x146   : > { %v782_v29 = vadd.f32 %v781_v27, %v780_v25  ;;  %v790_v30 = vrot.slane %v789_v28, 2  ;;  %v1091_v25 = vld [vmem:[#allocation6 + $0xd8] sm:$0xff]  ;;  %v1090_v27 = vld [vmem:[#allocation6 + $0xd0] sm:$0xff] }
 0x148   : > { %v783_v31 = vrot.slane %v782_v29, 1  ;;  %v791_v32 = vadd.f32 %v790_v30, %v789_v28  ;;  %v1072_v28 = vld [vmem:[#allocation6 + $0x58] sm:$0xff]  ;;  %v1071_v30 = vld [vmem:[#allocation6 + $0x50] sm:$0xff] }
 0x14a   : > { %v792_v33 = vrot.slane %v791_v32, 1  ;;  %v784_v34 = vadd.f32 %v783_v31, %v782_v29  ;;  %v1089_v29 = vld [vmem:[#allocation6 + $0xc8] sm:$0xff]  ;;  %v1088_v31 = vld [vmem:[#allocation6 + $0xc0] sm:$0xff] }
 0x14c   : > { %v793_v35 = vadd.f32 %v792_v33, %v791_v32  ;;  %v1087_v32 = vld [vmem:[#allocation6 + $0xb8] sm:$0xff]  ;;  %v1086_v33 = vld [vmem:[#allocation6 + $0xb0] sm:$0xff] }
 0x14e   : > { %v795_v36 = vsel %vm794_vm1, %v784_v34, %v793_v35  ;;  %v1085_v34 = vld [vmem:[#allocation6 + $0xa8] sm:$0xff] }
 0x14f   : > { %2313 = vmatmul.mubr.f32.vlgmr.msra.gmra.mxu1 %v795_v36  ;;  %v1070_v35 = vld [vmem:[#allocation6 + $0x48] sm:$0xff]  ;;  %v1084_v36 = vld [vmem:[#allocation6 + $0xa0] sm:$0xff] }
 0x150   : > { %2326 = vmatprep.mubr.msk.f32.mxu1 %vm2697_vm0, %v2696_v0  ;;  %2323 = vmatpush3.msra.mxu1 %v3011_v37 }
 0x151   : > { %2324 = vmatprep.subr.mxu1 %v2696_v0 }
 0x152   : > { %2325 = vmatpush3.msra.mxu1 %v3019_v38 }
 0x153   : > { %2364 = vmatprep.subr.mxu1 %v1076_v40 }
 0x20f   : > { %v862_v41 = vpop.f32.mrf.mxu1 }
 0x210   : > { %v866_v42 = vmul.f32 0.0078125, %v862_v41  ;;  %v1068_v41 = vld [vmem:[#allocation6 + $0x38] sm:$0xff] }
 0x211   : > { %v2314_v43 = vpop.f32.mrf.mxu1 }
 0x212   : > { %v867_v44 = vmul.f32 %v866_v42, %v866_v42  ;;  %v1067_v43 = vld [vmem:[#allocation6 + $0x30] sm:$0xff] }
 0x214   : > { %v869_v45 = vrot.slane %v867_v44, 7  ;;  %v1081_v44 = vld [vmem:[#allocation6 + $0x88] sm:$0xff] }
 0x216   : > { %v871_v46 = vsub.f32 %v866_v42, %v869_v45  ;;  %v1066_v45 = vld [vmem:[#allocation6 + $0x28] sm:$0xff] }
 0x218   : > { %v873_v47 = vadd.f32 1e-05, %v871_v46  ;;  %v1080_v46 = vld [vmem:[#allocation6 + $0x80] sm:$0xff] }
 0x21a   : > { %2562 = vrsqrt.f32 %v873_v47  ;;  %v1065_v47 = vld [vmem:[#allocation6 + $0x20] sm:$0xff] }
 0x227   : > { %v2563_v54 = vpop.eup %2562 }
 0x228   : > { %v882_v8 = vrot.slane %v2563_v54, %v3027_v53  ;;  %v1061_v54 = vld [vmem:[#allocation6] sm:$0xff] }
 0x22a   : > { %v883_v9 = vcombine.high %v882_v8, %v882_v8  ;;  %v3041_v8 = vsub.s32 0, %v3024_v52  ;;  %v1263_v52 = vld [vmem:[#allocation6 + $0x170] sm:$0xff] }
 0x22c   : > { %v890_v11 = vrot.slane %v883_v9, %v3027_v53 }
 0x22e   : > { %v892_v12 = vmul.f32 %v890_v11, %v872_v10 }
 0x230   : > { %v894_v18 = vmul.f32 %v892_v12, %v866_v42  ;;  %2320 = vmatmul.mubr.msk.f32.vlgmr.msra.gmra.mxu0 %vm896_vm2, %v892_v12  ;;  %v1082_v42 = vld [vmem:[#allocation6 + $0x90] sm:$0xff] }
 0x231   : > { %2330 = vmatpush3.msra.mxu0 %v1095_v39  ;;  %v1069_v39 = vld [vmem:[#allocation6 + $0x40] sm:$0xff] }
 0x232   : > { %v895_v21 = vsub.f32 %v893_v13, %v894_v18  ;;  %2331 = vmatprep.subr.mxu0 %v1094_v14 }
 0x233   : > { %2332 = vmatpush3.msra.mxu0 %v1094_v14 }
 0x234   : > { %2327 = vmatmul.mubr.msk.f32.vlgmr.msra.gmra.mxu1 %vm896_vm2, %v895_v21  ;;  %2333 = vmatprep.subr.mxu0 %v1093_v20 }
 0x235   : > { %2365 = vmatpush3.msra.mxu1 %v1076_v40  ;;  %2334 = vmatpush3.msra.mxu0 %v1093_v20  ;;  %v1083_v40 = vld [vmem:[#allocation6 + $0x98] sm:$0xff] }
 0x236   : > { %2366 = vmatprep.subr.mxu1 %v1075_v22  ;;  %2335 = vmatprep.subr.mxu0 %v1092_v23 }
 0x237   : > { %2367 = vmatpush3.msra.mxu1 %v1075_v22  ;;  %2336 = vmatpush3.msra.mxu0 %v1092_v23 }
 0x238   : > { %2368 = vmatprep.subr.mxu1 %v1074_v24  ;;  %2337 = vmatprep.subr.mxu0 %v1091_v25 }
 0x239   : > { %2369 = vmatpush3.msra.mxu1 %v1074_v24  ;;  %2338 = vmatpush3.msra.mxu0 %v1091_v25  ;;  %v1262_v25 = vld [vmem:[#allocation6 + $0x168] sm:$0xff] }
 0x23a   : > { %2370 = vmatprep.subr.mxu1 %v1073_v26  ;;  %2339 = vmatprep.subr.mxu0 %v1090_v27 }
 0x23b   : > { %2371 = vmatpush3.msra.mxu1 %v1073_v26  ;;  %2340 = vmatpush3.msra.mxu0 %v1090_v27  ;;  %v1261_v26 = vld [vmem:[#allocation6 + $0x160] sm:$0xff] }
 0x23c   : > { %2372 = vmatprep.subr.mxu1 %v1072_v28  ;;  %2341 = vmatprep.subr.mxu0 %v1089_v29 }
 0x23d   : > { %2373 = vmatpush3.msra.mxu1 %v1072_v28  ;;  %2342 = vmatpush3.msra.mxu0 %v1089_v29  ;;  %v1259_v29 = vld [vmem:[#allocation6 + $0x150] sm:$0xff] }
 0x23e   : > { %2374 = vmatprep.subr.mxu1 %v1071_v30  ;;  %2343 = vmatprep.subr.mxu0 %v1088_v31 }
 0x23f   : > { %2375 = vmatpush3.msra.mxu1 %v1071_v30  ;;  %2344 = vmatpush3.msra.mxu0 %v1088_v31  ;;  %v1258_v30 = vld [vmem:[#allocation6 + $0x148] sm:$0xff]  ;;  %v1257_v31 = vld [vmem:[#allocation6 + $0x140] sm:$0xff] }
 0x240   : > { %2345 = vmatprep.subr.mxu0 %v1087_v32  ;;  %2376 = vmatprep.subr.mxu1 %v1070_v35 }
 0x241   : > { %2346 = vmatpush3.msra.mxu0 %v1087_v32  ;;  %2377 = vmatpush3.msra.mxu1 %v1070_v35  ;;  %v1256_v32 = vld [vmem:[#allocation6 + $0x138] sm:$0xff] }
 0x242   : > { %2347 = vmatprep.subr.mxu0 %v1086_v33  ;;  %2378 = vmatprep.subr.mxu1 %v1069_v39 }
 0x243   : > { %2348 = vmatpush3.msra.mxu0 %v1086_v33  ;;  %2379 = vmatpush3.msra.mxu1 %v1069_v39 }
 0x244   : > { %2349 = vmatprep.subr.mxu0 %v1085_v34  ;;  %2380 = vmatprep.subr.mxu1 %v1068_v41 }
 0x245   : > { %2350 = vmatpush3.msra.mxu0 %v1085_v34  ;;  %2381 = vmatpush3.msra.mxu1 %v1068_v41 }
 0x246   : > { %2351 = vmatprep.subr.mxu0 %v1084_v36  ;;  %2382 = vmatprep.subr.mxu1 %v1067_v43 }
 0x247   : > { %2352 = vmatpush3.msra.mxu0 %v1084_v36  ;;  %2383 = vmatpush3.msra.mxu1 %v1067_v43 }
 0x248   : > { %2353 = vmatprep.subr.mxu0 %v1083_v40  ;;  %2384 = vmatprep.subr.mxu1 %v1066_v45 }
 0x249   : > { %2354 = vmatpush3.msra.mxu0 %v1083_v40  ;;  %2385 = vmatpush3.msra.mxu1 %v1066_v45 }
 0x24a   : > { %2355 = vmatprep.subr.mxu0 %v1082_v42  ;;  %2386 = vmatprep.subr.mxu1 %v1065_v47 }
 0x24b   : > { %2356 = vmatpush3.msra.mxu0 %v1082_v42  ;;  %2387 = vmatpush3.msra.mxu1 %v1065_v47 }
 0x24c   : > { %2357 = vmatprep.subr.mxu0 %v1081_v44  ;;  %2388 = vmatprep.subr.mxu1 %v1064_v49 }
 0x24d   : > { %2358 = vmatpush3.msra.mxu0 %v1081_v44  ;;  %2389 = vmatpush3.msra.mxu1 %v1064_v49 }
 0x24e   : > { %2359 = vmatprep.subr.mxu0 %v1080_v46  ;;  %2390 = vmatprep.subr.mxu1 %v1063_v50 }
 0x24f   : > { %2360 = vmatpush3.msra.mxu0 %v1080_v46  ;;  %2391 = vmatpush3.msra.mxu1 %v1063_v50 }
 0x250   : > { %2399 = vmatprep.subr.mxu0 %v1264_v48  ;;  %2392 = vmatprep.subr.mxu1 %v1062_v51 }
 0x251   : > { %2393 = vmatpush3.msra.mxu1 %v1062_v51 }
 0x252   : > { %2394 = vmatprep.subr.mxu1 %v1061_v54 }
 0x253   : > { %2395 = vmatpush3.msra.mxu1 %v1061_v54 }
 0x254   : > { %2434 = vmatprep.subr.mxu1 %v2696_v0 }
 0x2f0   : > { %v966_v9 = vpop.f32.mrf.mxu0 }
 0x2f1   : > { %v1046_v10 = vrot.slane %v966_v9, %v3041_v8 }
 0x2f2   : > { %v2321_v11 = vpop.f32.mrf.mxu0 }
 0x2f3   : > { %v1047_v13 = vmul.f32 %v1046_v10, %v2998_v19  ;;  %v1048_v14 = vmul.f32 %v1046_v10, %v2996_v17  ;;  %v1260_v17 = vld [vmem:[#allocation6 + $0x158] sm:$0xff] }
 0x2f4   : > { %v1039_v12 = vpop.f32.mrf.mxu1 }
 0x2f5   : > { %v1052_v18 = vrot.slane %v1039_v12, %v3041_v8 }
 0x2f6   : > { %v2328_v20 = vpop.f32.mrf.mxu1 }
 0x2f7   : > { %v1053_v21 = vadd.f32 %v1052_v18, %v1047_v13  ;;  %v1054_v22 = vadd.f32 %v1052_v18, %v1048_v14  ;;  %v1492_v20 = vld [vmem:[%s3209_s7 + $0x8] sm:$0xff] }
 0x2f9   : > { %v1055_v23 = vmax.f32 %v1053_v21, 0.0  ;;  %v1056_v24 = vmax.f32 %v1054_v22, 0.0  ;;  %v1491_v21 = vld [vmem:[%s3209_s7] sm:$0xff] }
 0x2fb   : > { %1057 = vst [vmem:[#allocation2 + $0x1] sm:$0xff] %v1055_v23  ;;  %1058 = vst [vmem:[#allocation2 + $0x11] sm:$0xff] %v1056_v24  ;;  %2361 = vmatprep.mubr.f32.mxu0 %v1055_v23 }
 0x2fc   : > { %2362 = vmatmul.mubr.f32.vlgmr.msra.gmra.mxu0 %v1056_v24 }
 0x2fd   : > { %2400 = vmatpush3.msra.mxu0 %v1264_v48 }
 0x2fe   : > { %2401 = vmatprep.subr.mxu0 %v1263_v52 }
 0x2ff   : > { %2402 = vmatpush3.msra.mxu0 %v1263_v52 }
 0x300   : > { %2403 = vmatprep.subr.mxu0 %v1262_v25 }
 0x301   : > { %2404 = vmatpush3.msra.mxu0 %v1262_v25 }
 0x302   : > { %v1059_v19 = vld [vmem:[#allocation2] sm:$0xff]  ;;  %v1060_v27 = vld [vmem:[#allocation2 + $0x10] sm:$0xff]  ;;  %2405 = vmatprep.subr.mxu0 %v1261_v26 }
 0x303   : > { %v1246_v28 = vld [vmem:[#allocation2 + $0x2] sm:$0xff]  ;;  %2396 = vmatprep.mubr.f32.mxu1 %v1059_v19  ;;  %2406 = vmatpush3.msra.mxu0 %v1261_v26 }
 0x304   : > { %2431 = vmatprep.mubr.f32.mxu0 %v1246_v28  ;;  %2397 = vmatmul.mubr.f32.vlgmr.msra.gmra.mxu1 %v1060_v27 }
 0x305   : > { %2407 = vmatprep.subr.mxu0 %v1260_v17  ;;  %2435 = vmatpush3.msra.mxu1 %v2883_v55  ;;  %v1255_v55 = vld [vmem:[#allocation6 + $0x130] sm:$0xff] }
 0x306   : > { %2408 = vmatpush3.msra.mxu0 %v1260_v17  ;;  %2436 = vmatprep.subr.mxu1 %v2696_v0 }
 0x307   : > { %2409 = vmatprep.subr.mxu0 %v1259_v29  ;;  %2437 = vmatpush3.msra.mxu1 %v2888_v56  ;;  %v1254_v56 = vld [vmem:[#allocation6 + $0x128] sm:$0xff] }
 0x308   : > { %2410 = vmatpush3.msra.mxu0 %v1259_v29  ;;  %2438 = vmatprep.subr.mxu1 %v2696_v0 }
 0x309   : > { %2411 = vmatprep.subr.mxu0 %v1258_v30  ;;  %2439 = vmatpush3.msra.mxu1 %v2895_v57  ;;  %v1253_v57 = vld [vmem:[#allocation6 + $0x120] sm:$0xff] }
 0x30a   : > { %2412 = vmatpush3.msra.mxu0 %v1258_v30  ;;  %2440 = vmatprep.subr.mxu1 %v2696_v0 }
 0x30b   : > { %2413 = vmatprep.subr.mxu0 %v1257_v31  ;;  %2441 = vmatpush3.msra.mxu1 %v2902_v58  ;;  %v1252_v58 = vld [vmem:[#allocation6 + $0x118] sm:$0xff] }
 0x30c   : > { %2414 = vmatpush3.msra.mxu0 %v1257_v31  ;;  %2442 = vmatprep.subr.mxu1 %v2696_v0 }
 0x30d   : > { %2415 = vmatprep.subr.mxu0 %v1256_v32  ;;  %2443 = vmatpush3.msra.mxu1 %v2909_v59  ;;  %v1251_v59 = vld [vmem:[#allocation6 + $0x110] sm:$0xff] }
 0x30e   : > { %2416 = vmatpush3.msra.mxu0 %v1256_v32  ;;  %2444 = vmatprep.subr.mxu1 %v2696_v0 }
 0x30f   : > { %2417 = vmatprep.subr.mxu0 %v1255_v55  ;;  %2445 = vmatpush3.msra.mxu1 %v2918_v60  ;;  %v1250_v60 = vld [vmem:[#allocation6 + $0x108] sm:$0xff] }
 0x310   : > { %2418 = vmatpush3.msra.mxu0 %v1255_v55  ;;  %2446 = vmatprep.subr.mxu1 %v2696_v0 }
 0x311   : > { %2419 = vmatprep.subr.mxu0 %v1254_v56  ;;  %2447 = vmatpush3.msra.mxu1 %v2925_v61  ;;  %v1249_v61 = vld [vmem:[#allocation6 + $0x100] sm:$0xff] }
 0x312   : > { %2420 = vmatpush3.msra.mxu0 %v1254_v56  ;;  %2448 = vmatprep.subr.mxu1 %v2696_v0 }
 0x313   : > { %2421 = vmatprep.subr.mxu0 %v1253_v57  ;;  %2449 = vmatpush3.msra.mxu1 %v2932_v62  ;;  %v1247_v62 = vld [vmem:[#allocation2 + $0x12] sm:$0xff] }
 0x314   : > { %2422 = vmatpush3.msra.mxu0 %v1253_v57  ;;  %2450 = vmatprep.subr.mxu1 %v2696_v0 }
 0x315   : > { %2423 = vmatprep.subr.mxu0 %v1252_v58  ;;  %2451 = vmatpush3.msra.mxu1 %v2939_v63 }
 0x316   : > { %2424 = vmatpush3.msra.mxu0 %v1252_v58  ;;  %2452 = vmatprep.subr.mxu1 %v2696_v0  ;;  %v1452_v58 = vld [vmem:[%s3207_s5] sm:$0x1] }
 0x317   : > { %2425 = vmatprep.subr.mxu0 %v1251_v59  ;;  %2453 = vmatpush3.msra.mxu1 %v2946_v1 }
 0x318   : > { %2426 = vmatpush3.msra.mxu0 %v1251_v59  ;;  %2454 = vmatprep.subr.mxu1 %v2696_v0 }
 0x319   : > { %2427 = vmatprep.subr.mxu0 %v1250_v60  ;;  %2455 = vmatpush3.msra.mxu1 %v2953_v2 }
 0x31a   : > { %2428 = vmatpush3.msra.mxu0 %v1250_v60  ;;  %2456 = vmatprep.subr.mxu1 %v2696_v0 }
 0x31b   : > { %2429 = vmatprep.subr.mxu0 %v1249_v61  ;;  %2457 = vmatpush3.msra.mxu1 %v2960_v3 }
 0x31c   : > { %2430 = vmatpush3.msra.mxu0 %v1249_v61  ;;  %2458 = vmatprep.subr.mxu1 %v2696_v0  ;;  %v1473_v61 = vld [vmem:[%s3208_s6] sm:$0x1] }
 0x31d   : > { %2432 = vmatmul.mubr.f32.vlgmr.msra.gmra.mxu0 %v1247_v62  ;;  %2459 = vmatpush3.msra.mxu1 %v2966_v4 }
 0x31e   : > { %2460 = vmatprep.subr.mxu1 %v2696_v0  ;;  %2466 = vmatprep.mubr.msk.f32.mxu1 %vm2697_vm0, %v2696_v0 }
 0x31f   : > { %2461 = vmatpush3.msra.mxu1 %v2972_v5  ;;  %2469 = vmatprep.subr.mxu0 %v2696_v0 }
 0x320   : > { %2462 = vmatprep.subr.mxu1 %v2696_v0  ;;  %2473 = vmatprep.mubr.msk.f32.mxu0 %vm2697_vm0, %v2696_v0 }
 0x321   : > { %2463 = vmatpush3.msra.mxu1 %v2983_v6  ;;  %2470 = vmatpush3.msra.mxu0 %v1492_v20 }
 0x322   : > { %2464 = vmatprep.subr.mxu1 %v2696_v0  ;;  %2471 = vmatprep.subr.mxu0 %v2696_v0 }
 0x323   : > { %2465 = vmatpush3.msra.mxu1 %v2990_v7  ;;  %2472 = vmatpush3.msra.mxu0 %v1491_v21 }
 0x324   : > { %2476 = vmatprep.subr.mxu1 %v2696_v0  ;;  %2481 = vmatprep.subr.mxu0 %v2696_v0 }
 0x3bc   : > { %v2363_v63 = vpop.f32.mrf.mxu0 }
 0x3be   : > { %v1162_v2 = vpop.f32.mrf.mxu0 }
 0x3c4   : > { %v2398_v1 = vpop.f32.mrf.mxu1 }
 0x3c5   : > { %v1243_v4 = vadd.f32 %v2398_v1, %v2363_v63 }
 0x3c6   : > { %v1237_v3 = vpop.f32.mrf.mxu1 }
 0x3c7   : > { %v1238_v33 = vadd.f32 %v1237_v3, %v1162_v2 }
 0x3dd   : > { %v2433_v5 = vpop.f32.mrf.mxu0 }
 0x3de   : > { %v3084_v34 = vadd.f32 %v2433_v5, %v1243_v4 }
 0x3df   : > { %v1331_v35 = vpop.f32.mrf.mxu0 }
 0x3e0   : > { %v1348_v36 = vrot.slane %v3084_v34, 4  ;;  %v3087_v39 = vadd.f32 %v1331_v35, %v1238_v33  ;;  %v1355_v7 = vmul.f32 %v3084_v34, %v3084_v34  ;;  %v1574_v33 = vld [vmem:[%s3211_s9] sm:$0xf] }
 0x3e1   : > { %v2001_v35 = vld [vmem:[%s3210_s8] ss:$0 sm:$0xff] }
 0x3e2   : > { %v1349_v6 = vadd.f32 %v1348_v36, %v3084_v34  ;;  %v1342_v40 = vrot.slane %v3087_v39, 4  ;;  %v1354_v41 = vmul.f32 %v3087_v39, %v3087_v39 }
 0x3e4   : > { %v1350_v42 = vrot.slane %v1349_v6, 2  ;;  %v1343_v43 = vadd.f32 %v1342_v40, %v3087_v39  ;;  %v1356_v44 = vadd.f32 %v1355_v7, %v1354_v41  ;;  %v2003_v41 = vld [vmem:[%s3212_s10] ss:$0 sm:$0xff] }
 0x3e6   : > { %v1344_v45 = vrot.slane %v1343_v43, 2  ;;  %v1357_v46 = vrot.slane %v1356_v44, 4  ;;  %v1351_v47 = vadd.f32 %v1350_v42, %v1349_v6 }
 0x3e8   : > { %v1345_v48 = vadd.f32 %v1344_v45, %v1343_v43  ;;  %v1358_v49 = vadd.f32 %v1357_v46, %v1356_v44  ;;  %v1352_v54 = vrot.slane %v1351_v47, 1 }
 0x3ea   : > { %v1346_v50 = vrot.slane %v1345_v48, 1  ;;  %v1359_v51 = vrot.slane %v1358_v49, 2  ;;  %v1353_v12 = vadd.f32 %v1352_v54, %v1351_v47 }
 0x3ec   : > { %v1360_v9 = vadd.f32 %v1359_v51, %v1358_v49  ;;  %v1347_v10 = vadd.f32 %v1346_v50, %v1345_v48 }
 0x3ee   : > { %v1361_v11 = vrot.slane %v1360_v9, 1  ;;  %v1366_v14 = vsel %vm1365_vm3, %v1353_v12, %v1347_v10 }
 0x3f0   : > { %v1362_v13 = vadd.f32 %v1361_v11, %v1360_v9 }
 0x3f2   : > { %v1369_v18 = vsel %vm1368_vm4, %v1366_v14, %v1362_v13 }
 0x3f3   : > { %2467 = vmatmul.mubr.f32.vlgmr.msra.gmra.mxu1 %v1369_v18 }
 0x3f4   : > { %2478 = vmatprep.mubr.msk.f32.mxu1 %vm2697_vm0, %v2696_v0  ;;  %2477 = vmatpush3.msk.msra.mxu1 %vm1586_vm6, %v1574_v33 }
 0x3f5   : > { %2488 = vmatprep.subr.mxu1 %v2696_v0 }
 0x4b3   : > { %v1436_v22 = vpop.f32.mrf.mxu1 }
 0x4b4   : > { %v1441_v23 = vsel %vm1440_vm5, %v1436_v22, 0.0  ;;  %v1449_v29 = vmul.f32 0.0078125, %v1436_v22  ;;  %v1476_v2 = vmul.f32 0.015625, %v1436_v22 }
 0x4b5   : > { %v1442_v24 = vrot.slane %v1441_v23, 4  ;;  %v2468_v52 = vpop.f32.mrf.mxu1 }
 0x4b7   : > { %v1443_v25 = vadd.f32 %v1442_v24, %v1441_v23 }
 0x4b9   : > { %v1444_v26 = vrot.slane %v1443_v25, 2 }
 0x4bb   : > { %v1445_v17 = vadd.f32 %v1444_v26, %v1443_v25 }
 0x4bd   : > { %v1446_v19 = vrot.slane %v1445_v17, 1 }
 0x4bf   : > { %v1447_v27 = vadd.f32 %v1446_v19, %v1445_v17 }
 0x4c1   : > { %v1448_v28 = vmul.f32 0.0078125, %v1447_v27 }
 0x4c3   : > { %v1450_v30 = vmul.f32 %v1448_v28, %v1448_v28 }
 0x4c5   : > { %v1451_v31 = vsub.f32 %v1449_v29, %v1450_v30 }
 0x4c7   : > { %v1453_v32 = vadd.f32 1e-05, %v1451_v31 }
 0x4c9   : > { %2564 = vrsqrt.f32 %v1453_v32 }
 0x4d6   : > { %v2565_v55 = vpop.eup %2564 }
 0x4d7   : > { %v1462_v56 = vrot.slane %v2565_v55, %v3027_v53 }
 0x4d9   : > { %v1469_v57 = vrot.slane %v1462_v56, %v3027_v53 }
 0x4db   : > { %v1470_v59 = vcombine.high %v1469_v57, %v1469_v57 }
 0x4dd   : > { %v1472_v60 = vmul.f32 %v1470_v59, %v1452_v58 }
 0x4df   : > { %v1474_v62 = vmul.f32 %v1472_v60, %v1448_v28  ;;  %v1481_v63 = vrot.slane %v1472_v60, %v3041_v8 }
 0x4e1   : > { %v1475_v1 = vsub.f32 %v1473_v61, %v1474_v62  ;;  %v1483_v3 = vmul.f32 %v1481_v63, %v1476_v2 }
 0x4e3   : > { %v1488_v4 = vrot.slane %v1475_v1, %v3041_v8 }
 0x4e5   : > { %v1490_v5 = vadd.f32 %v1488_v4, %v1483_v3 }
 0x4e7   : > { %2474 = vmatmul.mubr.msk.f32.vlgmr.msra.gmra.mxu0 %vm896_vm2, %v1490_v5 }
 0x4e8   : > { %2482 = vmatpush3.msra.mxu0 %v3011_v37  ;;  %2485 = vmatprep.mubr.msk.f32.mxu0 %vm2697_vm0, %v2696_v0 }
 0x4e9   : > { %2483 = vmatprep.subr.mxu0 %v2696_v0 }
 0x4ea   : > { %2484 = vmatpush3.msra.mxu0 %v3019_v38 }
 0x5a7   : > { %v1569_v36 = vpop.f32.mrf.mxu0 }
 0x5a8   : > { %v1570_v6 = vadd.f32 %v2001_v35, %v1569_v36 }
 0x5a9   : > { %v2475_v7 = vpop.f32.mrf.mxu0 }
 0x5aa   : > { %v1573_v40 = vmax.f32 %v1570_v6, 0.0 }
 0x5ac   : > { %2479 = vmatmul.mubr.msk.f32.vlgmr.msra.gmra.mxu1 %vm1582_vm7, %v1573_v40 }
 0x5ad   : > { %2489 = vmatpush3.msra.mxu1 %v3011_v37  ;;  %2492 = vmatprep.mubr.msk.f32.mxu1 %vm2697_vm0, %v2696_v0 }
 0x5ae   : > { %2490 = vmatprep.subr.mxu1 %v2696_v0 }
 0x5af   : > { %2491 = vmatpush3.msra.mxu1 %v3019_v38 }
 0x66c   : > { %v1656_v42 = vpop.f32.mrf.mxu1 }
 0x66d   : > { %v1657_v43 = vadd.f32 %v2003_v41, %v1656_v42 }
 0x66e   : > { %v2480_v44 = vpop.f32.mrf.mxu1 }
 0x66f   : > { %v2006_v45 = vmul.f32 -1.442695, %v1657_v43 }
 0x671   : > { %2566 = vpow2.f32 %v2006_v45 }
 0x67e   : > { %v2567_v46 = vpop.eup %2566 }
 0x67f   : > { %v1663_v47 = vadd.f32 1.0, %v2567_v46 }
 0x681   : > { %2568 = vrcp.f32 %v1663_v47 }
 0x68e   : > { %v2569_v37 = vpop.eup %2568 }
 0x68f   : > { %v1666_v48 = vmul.f32 %v2569_v37, %v1481_v63  ;;  %v1740_v49 = vmul.f32 %v2569_v37, %v1488_v4 }
 0x691   : > { %2486 = vmatmul.mubr.msk.f32.vlgmr.msra.gmra.mxu0 %vm896_vm2, %v1666_v48  ;;  %2493 = vmatmul.mubr.msk.f32.vlgmr.msra.gmra.mxu1 %vm896_vm2, %v1740_v49 }
 0x751   : > { %v1736_v0 = vpop.f32.mrf.mxu0  ;;  %v1810_v38 = vpop.f32.mrf.mxu1 }
 0x752   : > { %v1821_v50 = vrot.slane %v1736_v0, %v3027_v53  ;;  %v1856_v51 = vrot.slane %v1810_v38, %v3027_v53 }
 0x753   : > { %v2487_v54 = vpop.f32.mrf.mxu0  ;;  %v2494_v9 = vpop.f32.mrf.mxu1 }
 0x754   : > { %v1822_v10 = vcombine.high %v1821_v50, %v1821_v50  ;;  %v1829_v11 = vrot.slane %v1821_v50, %v3027_v53  ;;  %v1857_v12 = vcombine.high %v1856_v51, %v1856_v51  ;;  %v1864_v13 = vrot.slane %v1856_v51, %v3027_v53 }
 0x756   : > { %v1836_v14 = vrot.slane %v1822_v10, %v3027_v53  ;;  %v1840_v18 = vrot.slane %v1829_v11, %v3041_v8  ;;  %v1871_v20 = vrot.slane %v1857_v12, %v3027_v53  ;;  %v1875_v23 = vrot.slane %v1864_v13, %v3041_v8 }
 0x758   : > { %v1844_v21 = vrot.slane %v1836_v14, %v3041_v8  ;;  %v1847_v22 = vmul.f32 %v1840_v18, %v3087_v39  ;;  %v1879_v52 = vrot.slane %v1871_v20, %v3041_v8 }
 0x75a   : > { %v1848_v24 = vmul.f32 %v1844_v21, %v3084_v34  ;;  %v1882_v25 = vadd.f32 %v1875_v23, %v1847_v22 }
 0x75c   : > { %v1883_v26 = vadd.f32 %v1879_v52, %v1848_v24  ;;  %v1884_v17 = vadd.f32 %v1882_v25, %v2870_v15 }
 0x75e   : > { %v1885_v53 = vadd.f32 %v1883_v26, %v2873_v16  ;;  %v1886_v19 = vmax.f32 %v1884_v17, 0.0 }
 0x760   : > { %v1887_v8 = vmax.f32 %v1885_v53, 0.0  ;;  %1888 = vst [vmem:[%s463_s16] sm:$0xff] %v1886_v19 }
 0x762   : > { %1889 = vst [vmem:[%s463_s16 + $0x8] sm:$0xff] %v1887_v8 }
 0x763   : > { %2635 = shalt.err (!%p2632_p3)
}
 0x764   : > { %s2636_s22 = scalar_lea.hbm %s3158_s27, 256  ;;  %s2640_s24 = scalar_lea.hbm %s3215_s13, 512 }
 0x765   : > { %p2637_p2 = scmp.ne.s32.totalorder %s3158_s27, %s2636_s22  ;;  %p2641_p7 = scmp.lt.s32.totalorder %s3158_s27, %s3215_s13 }
 0x766   : > { %p2642_p6 = scmp.lt.s32.totalorder %s2640_s24, %s2636_s22 }
 0x767   : > { %p2638_p4 = pnand %p2637_p2, %p2810_p5 }
 0x768   : > { %p2643_p9 = por %p2642_p6, %p2641_p7 }
 0x769   : > { %p2639_p13 = pneg %p2638_p4 }
 0x76b   : > { %p2644_p10 = pnand %p2643_p9, %p2639_p13 }
 0x76d   : > { %2647 = shalt.err (!%p2644_p10)
}
 0x76e   : > { %s2700_s29 = smov 128   ;;  %s2701_s20 = smov 8  }
 0x76f   : > { %2503 = dma.vmem_to_hbm [thread:$0]  (%p2810_p5), %s3160_s21, 256, %s3158_s27, %s3162_s14, %s2700_s29, %s2700_s29, %s2701_s20  }
 0x770 PF: > { %p2520_p12 = scmp.ge.s32.totalorder %s2690_s28, 2  ;;  %s1919_s23 = sand.u32 1, %s2678_s25  }
 0x771   : > { %p3231_p8 = scmp.ne.s32.totalorder %s3224_s19, 0  ;;  %s1920_s22 = scalar_lea.sflag [#allocation5], %s1919_s23 }
 0x773   : > { %p2513_p11 = pnand %p2520_p12, %p3231_p8 }
 0x775   : > { %p2514_p0 = pneg %p2513_p11 }
 0x777   : > { %2673 = dma.done.wait (%p2514_p0), %s1920_s22, 256  }
 0x778   : > { %2675 = vsyncadd (%p2514_p0), %s1920_s22, 4294967040  ;;  %s3232_s28 = sld [smem:[#allocation13_spill]]  ;;  %s3235_s25 = smov %s2682_s26 }
 0x779   : > { %s3233_s30 = sld [smem:[#allocation12_spill]] }
 0x77a   : > { %s3234_s27 = sld [smem:[#allocation14_spill]] }
 0x77e   : > { %p25_p1 = scmp.ge.s32.totalorder %s3232_s28, 4  }
 0x77f   : > { %s3236_s26 = smov %s3233_s30 }
 0x780   :  { %27 = sbr.rel (!%p25_p1) target bundleno = 5 (0x5), region = 120 }
 0x785   :  { %1925 = vsyncpa [#allocation4], 1 }
 0x786   :  { %1927 = vsyncpa [#allocation4 + $0x1], 1 }
 0x787   :  { %1928 = vsyncpa [#allocation7], 1 }
 0x788   :  { %1929 = vsyncpa [#allocation5], 1 }
 0x789   :  { %1931 = vsyncpa [#allocation5 + $0x1], 1 }

</bundles_post_ra>
